<compile_context>
chip_gen: v7x
topology: tpu7x:2x2x1
jax: 0.10.0
libtpu: 0.0.40
codegen_flags: <defaults>
</compile_context>

<pallas_src>
import functools
import itertools

import jax
import jax.numpy as jnp
from jax.experimental import pallas as pl
from jax.experimental.pallas import tpu as pltpu


def _monomial_exponents(dim: int, degree: int):
    """All multi-indices (e_1, ..., e_dim) with total degree <= degree, fixed order."""
    exps = []
    for total in range(degree + 1):
        for combo in itertools.combinations_with_replacement(range(dim), total):
            e = [0] * dim
            for d in combo:
                e[d] += 1
            exps.append(tuple(e))
    return tuple(exps)


def _rbf_poly_kernel(xt_ref, centers_ref, rbf_w_ref, poly_w_ref, out_ref, *, dim, exp_table):
    # xt_ref:      (dim, tm)   tile of input points, points along lanes
    # centers_ref: (C, dim)    all centers (constant block index -> fetched once)
    # rbf_w_ref:   (1, C)      rbf coefficients as a lane-dense row (MXU contraction)
    # poly_w_ref:  (n_poly,)   polynomial coefficients in SMEM (scalar-slot reads)
    # out_ref:     (1, 1, tm)  lane-dense output block
    xt = xt_ref[...]                                  # (dim, tm) f32
    c = centers_ref[...]                              # (C, dim)  f32
    tm = xt.shape[1]

    # Per-coordinate point rows, hoisted and reused by the distance and polynomial paths.
    x_rows = [xt[d:d + 1, :] for d in range(dim)]     # each (1, tm)

    # Squared pairwise distances (C, tm): centers broadcast along lanes, points along
    # sublanes.  Unrolled over the tiny static coordinate dim (exact diff^2 -> no
    # Gram-matrix cancellation feeding sqrt).
    sq = None
    for d in range(dim):
        diff = c[:, d:d + 1] - x_rows[d]              # (C,1) - (1,tm) -> (C,tm)
        sq = diff * diff if sq is None else sq + diff * diff
    r = jnp.sqrt(sq)
    a = sq * r                                        # ||x - c||^3  (phs_kernel(3)), (C, tm)

    # RBF contraction on the MXU, lane-dense output row.
    out = jnp.dot(rbf_w_ref[...], a, preferred_element_type=jnp.float32)   # (1, tm)

    # Polynomial tail: a few FMAs on (1, tm) vregs, coefficients via the scalar slot.
    for k, exps in enumerate(exp_table):
        w = poly_w_ref[k]
        term = None
        for d, e in enumerate(exps):
            for _ in range(e):
                term = x_rows[d] if term is None else term * x_rows[d]
        out = out + w if term is None else out + w * term

    out_ref[...] = out.reshape(1, 1, tm)


def rbf_interpolant_free_centers(x, centers, rbf_coefs, poly_coefs, degree, *, tm=512):
    """Forward pass of RBFInterpolantFreeCenters with kernel=phs_kernel(3)."""
    N, dim = x.shape
    C, dim_c = centers.shape
    assert dim_c == dim
    exp_table = _monomial_exponents(dim, degree)
    n_poly = len(exp_table)
    assert rbf_coefs.shape == (C, 1)
    assert poly_coefs.shape == (n_poly, 1)

    # Lane-aligned point tile (multiple of 128; default 512 is also a multiple of the
    # 256-wide v6e/v7x MXU).  Shrink for tiny N so we don't over-pad.
    tm = max(128, (min(tm, pl.cdiv(N, 128) * 128) // 128) * 128)
    grid = pl.cdiv(N, tm)
    n_pad = grid * tm

    # Points along lanes; zero-pad N up to a multiple of tm (padded outputs sliced off).
    xt = jnp.zeros((dim, n_pad), jnp.float32).at[:, :N].set(x.T.astype(jnp.float32))
    rbf_w = rbf_coefs.astype(jnp.float32).reshape(1, C)
    poly_w = poly_coefs.astype(jnp.float32).reshape(n_poly)

    kernel = functools.partial(_rbf_poly_kernel, dim=dim, exp_table=exp_table)

    out = pl.pallas_call(
        kernel,
        out_shape=jax.ShapeDtypeStruct((grid, 1, tm), jnp.float32),
        grid_spec=pltpu.PrefetchScalarGridSpec(
            num_scalar_prefetch=0,
            grid=(grid,),
            in_specs=[
                pl.BlockSpec((dim, tm), lambda i: (0, i)),            # x tile (points on lanes)
                pl.BlockSpec((C, dim), lambda i: (0, 0)),             # centers (grid-invariant)
                pl.BlockSpec((1, C), lambda i: (0, 0)),               # rbf coef row (grid-invariant)
                pl.BlockSpec(memory_space=pltpu.MemorySpace.SMEM),    # poly coefs (scalars)
            ],
            out_specs=pl.BlockSpec((1, 1, tm), lambda i: (i, 0, 0)),
        ),
        compiler_params=pltpu.CompilerParams(
            dimension_semantics=("parallel",)),
    )(xt, centers.astype(jnp.float32), rbf_w, poly_w)

    return out.reshape(n_pad, 1)[:N]


def reference(x, centers, rbf_coefs, poly_coefs, degree):
    """Pure-JAX reference identical to the PyTorch forward."""
    dim = x.shape[1]
    exp_table = _monomial_exponents(dim, degree)
    diff = x[:, None, :] - centers[None, :, :]              # (N, C, dim)
    r = jnp.sqrt(jnp.sum(diff * diff, axis=-1))             # (N, C)
    rbf_out = (r ** 3) @ rbf_coefs                          # (N, 1)
    P = jnp.stack(
        [jnp.prod(x ** jnp.asarray(e, jnp.float32), axis=-1) for e in exp_table],
        axis=-1)                                            # (N, n_poly)
    poly_out = P @ poly_coefs                               # (N, 1)
    return rbf_out + poly_out


if __name__ == "__main__":
    # Module config: RBFInterpolantFreeCenters(n_centers=128, degree=1, dim=2, kernel=phs_kernel(3))
    dim = 2
    n_centers = 128
    degree = 1
    N = 1000   # deliberately not a multiple of the tile -> exercises the padding path

    key = jax.random.PRNGKey(0)
    k_x, k_c, k_rc, k_pc = jax.random.split(key, 4)

    x = jax.random.uniform(k_x, (N, dim), dtype=jnp.float32)
    centers = jax.random.uniform(k_c, (n_centers, dim), dtype=jnp.float32)
    rbf_coefs = 0.1 * jax.random.normal(k_rc, (n_centers, 1), dtype=jnp.float32)
    n_poly = len(_monomial_exponents(dim, degree))
    poly_coefs = 0.1 * jax.random.normal(k_pc, (n_poly, 1), dtype=jnp.float32)

    out = rbf_interpolant_free_centers(x, centers, rbf_coefs, poly_coefs, degree)
    out = jax.block_until_ready(out)

    ref = reference(x, centers, rbf_coefs, poly_coefs, degree)
    assert out.shape == (N, 1)
    assert jnp.allclose(out, ref, atol=1e-3, rtol=1e-3), "mismatch vs reference"

    print("KERNEL_OK")
</pallas_src>

<mosaic_0001>
module attributes {stable_mosaic.version = 11 : i64} {
  func.func @_rbf_poly_kernel(%arg0: i32, %arg1: memref<2x512xf32, #tpu.memory_space<vmem>>, %arg2: memref<128x2xf32, #tpu.memory_space<vmem>>, %arg3: memref<1x128xf32, #tpu.memory_space<vmem>>, %arg4: memref<3xf32, #tpu.memory_space<smem>>, %arg5: memref<1x1x512xf32, #tpu.memory_space<vmem>>) attributes {dimension_semantics = [#tpu.dimension_semantics<parallel>], iteration_bounds = array<i64: 2>, scalar_prefetch = 0 : i64, scratch_operands = 0 : i64, tpu.core_type = #tpu.core_type<tc>, window_params = [{transform_indices = @transform_0, window_bounds = array<i64: 2, 512>}, {pipeline_mode = #tpu.pipeline_mode<synchronous>, transform_indices = @transform_1, window_bounds = array<i64: 128, 2>}, {pipeline_mode = #tpu.pipeline_mode<synchronous>, transform_indices = @transform_2, window_bounds = array<i64: 1, 128>}, {transform_indices = @transform_3, window_bounds = array<i64: 3>}, {transform_indices = @transform_4, window_bounds = array<i64: 1, 1, 512>}]} {
    %c0 = arith.constant 0 : index
    %c0_0 = arith.constant 0 : index
    %0 = vector.load %arg1[%c0, %c0_0] : memref<2x512xf32, #tpu.memory_space<vmem>>, vector<2x512xf32>
    %c0_1 = arith.constant 0 : index
    %c0_2 = arith.constant 0 : index
    %1 = vector.load %arg2[%c0_1, %c0_2] : memref<128x2xf32, #tpu.memory_space<vmem>>, vector<128x2xf32>
    %2 = vector.extract_strided_slice %0 {offsets = [0, 0], sizes = [1, 512], strides = [1, 1]} : vector<2x512xf32> to vector<1x512xf32>
    %3 = vector.extract_strided_slice %0 {offsets = [1, 0], sizes = [1, 512], strides = [1, 1]} : vector<2x512xf32> to vector<1x512xf32>
    %4 = vector.extract_strided_slice %1 {offsets = [0, 0], sizes = [128, 1], strides = [1, 1]} : vector<128x2xf32> to vector<128x1xf32>
    %5 = vector.broadcast %4 : vector<128x1xf32> to vector<128x512xf32>
    %6 = vector.broadcast %2 : vector<1x512xf32> to vector<128x512xf32>
    %7 = arith.subf %5, %6 : vector<128x512xf32>
    %8 = arith.mulf %7, %7 : vector<128x512xf32>
    %9 = vector.extract_strided_slice %1 {offsets = [0, 1], sizes = [128, 1], strides = [1, 1]} : vector<128x2xf32> to vector<128x1xf32>
    %10 = vector.broadcast %9 : vector<128x1xf32> to vector<128x512xf32>
    %11 = vector.broadcast %3 : vector<1x512xf32> to vector<128x512xf32>
    %12 = arith.subf %10, %11 : vector<128x512xf32>
    %13 = arith.mulf %12, %12 : vector<128x512xf32>
    %14 = arith.addf %8, %13 : vector<128x512xf32>
    %15 = math.sqrt %14 : vector<128x512xf32>
    %16 = arith.mulf %14, %15 : vector<128x512xf32>
    %c0_3 = arith.constant 0 : index
    %c0_4 = arith.constant 0 : index
    %17 = vector.load %arg3[%c0_3, %c0_4] : memref<1x128xf32, #tpu.memory_space<vmem>>, vector<1x128xf32>
    %cst = arith.constant dense<0.000000e+00> : vector<1x512xf32>
    %18 = tpu.matmul %17, %16, %cst {dimension_numbers = #tpu.dot_dimension_numbers<[1], [0], [0], [1], [0, 0, 1, 1], [], []>} : vector<1x128xf32>, vector<128x512xf32>, vector<1x512xf32> -> vector<1x512xf32>
    %c0_5 = arith.constant 0 : index
    %19 = memref.load %arg4[%c0_5] : memref<3xf32, #tpu.memory_space<smem>>
    %20 = vector.broadcast %19 : f32 to vector<1x512xf32>
    %21 = arith.addf %18, %20 : vector<1x512xf32>
    %c1 = arith.constant 1 : index
    %22 = memref.load %arg4[%c1] : memref<3xf32, #tpu.memory_space<smem>>
    %23 = vector.broadcast %22 : f32 to vector<1x512xf32>
    %24 = arith.mulf %23, %2 : vector<1x512xf32>
    %25 = arith.addf %21, %24 : vector<1x512xf32>
    %c2 = arith.constant 2 : index
    %26 = memref.load %arg4[%c2] : memref<3xf32, #tpu.memory_space<smem>>
    %27 = vector.broadcast %26 : f32 to vector<1x512xf32>
    %28 = arith.mulf %27, %3 : vector<1x512xf32>
    %29 = arith.addf %25, %28 : vector<1x512xf32>
    %30 = vector.shape_cast %29 : vector<1x512xf32> to vector<1x1x512xf32>
    %c0_6 = arith.constant 0 : index
    %c0_7 = arith.constant 0 : index
    %c0_8 = arith.constant 0 : index
    %31 = vector.load %arg5[%c0_6, %c0_7, %c0_8] : memref<1x1x512xf32, #tpu.memory_space<vmem>>, vector<1x1x512xf32>
    tpu.vector_store %arg5[%c0_6, %c0_7, %c0_8], %30 {strides = array<i32>} : memref<1x1x512xf32, #tpu.memory_space<vmem>>, vector<1x1x512xf32>,
    return
  }
  func.func @transform_0(%arg0: i32) -> (i32, i32) {
    %c0_i32 = arith.constant 0 : i32
    %c0_i32_0 = arith.constant 0 : i32
    return %c0_i32, %arg0 : i32, i32
  }
  func.func @transform_1(%arg0: i32) -> (i32, i32) {
    %c0_i32 = arith.constant 0 : i32
    %c0_i32_0 = arith.constant 0 : i32
    %c0_i32_1 = arith.constant 0 : i32
    return %c0_i32, %c0_i32_0 : i32, i32
  }
  func.func @transform_2(%arg0: i32) -> (i32, i32) {
    %c0_i32 = arith.constant 0 : i32
    %c0_i32_0 = arith.constant 0 : i32
    %c0_i32_1 = arith.constant 0 : i32
    return %c0_i32, %c0_i32_0 : i32, i32
  }
  func.func @transform_3(%arg0: i32) -> i32 {
    %c0_i32 = arith.constant 0 : i32
    %c0_i32_0 = arith.constant 0 : i32
    return %c0_i32 : i32
  }
  func.func @transform_4(%arg0: i32) -> (i32, i32, i32) {
    %c0_i32 = arith.constant 0 : i32
    %c0_i32_0 = arith.constant 0 : i32
    %c0_i32_1 = arith.constant 0 : i32
    return %arg0, %c0_i32, %c0_i32_0 : i32, i32, i32
  }
}

</mosaic_0001>

<bundles_post_ra>
// kernel: tpu_custom_call.1
= control target key start
LH: loop header
LB: loop body
LE: loop exit
PB: predicated region body
PF: predicated region fallthrough
CT: control target
= control target key end

     0   :  { %9 = vsyncpa [#allocation4], 0  ;;  %s3341_s0 = inlined_call_operand.vmem [shape: f32[2,1024], index: 0, kind: input, shape index: {}]   ;;  %s3342_s1 = inlined_call_operand.vmem [shape: f32[128,2], index: 1, kind: input, shape index: {}]   ;;  %s3343_s2 = inlined_call_operand.vmem [shape: f32[1,128], index: 2, kind: input, shape index: {}]   ;;  %s3344_s3 = inlined_call_operand.vmem [shape: f32[3], index: 3, kind: input, shape index: {}]   ;;  %s3345_s4 = inlined_call_operand.hbm [shape: f32[2,1,512], index: 4, kind: output, shape index: {}]  }
   0x1   :  { %10 = vsyncpa [#allocation3], 0 }
   0x2   :  { %12 = vsyncpa [#allocation3 + $0x1], 0  ;;  %s1995_s15 = smov 0   ;;  %s1997_s16 = smov 0  }
   0x3   :  { %s1999_s17 = smov 0   ;;  %s2001_s18 = smov 0  }
   0x4 LB: > { %s2016_s19 = sadd.s32 4294967295, %s1962_s18   ;;  %s1599_s20 = sadd.s32 4294967294, %s1962_s18   ;;  %s1962_s18 = sphi %s2001_s18, %s3422_s18   ;;  %s1958_s17 = sphi %s1999_s17, %s3421_s17   ;;  %s1954_s16 = sphi %s1997_s16, %s3420_s16   ;;  %s1950_s15 = sphi %s1995_s15, %s3419_s15  }
   0x5   : > { %s2020_s21 = sadd.s32 1, %s1962_s18   ;;  %s114_s22 = sadd.s32 1, %s1958_s17 }
   0x6   : > { %s111_s23 = ssub.s32 %s1962_s18, %s2020_s21  ;;  %p124_p0 = scmp.ne.s32.totalorder %s1958_s17, %s1954_s16 }
   0x7   : > { %p112_p1 = scmp.eq.s32.totalorder %s111_s23, 0  ;;  %p125_p2 = scmp.eq.s32.totalorder %s2016_s19, 1 }
   0x8   : > { %p130_p3 = scmp.ne.s32.totalorder %s1954_s16, %s1950_s15  ;;  %p131_p4 = scmp.eq.s32.totalorder %s1599_s20, 1 }
   0x9   : > { %s2031_s24 = scalar_select %p112_p1, %s1958_s17, %s114_s22  }
   0xa   : > { %p2033_p5 = por %p125_p2, %p124_p0  ;;  %p2037_p6 = por %p131_p4, %p130_p3 }
   0xb   : > { %p1600_p7 = scmp.ge.s32.totalorder %s1962_s18, 1  ;;  %p138_p8 = scmp.lt.s32.totalorder %s1962_s18, 3 }
   0xc   : > { %p1694_p9 = scmp.eq.s32.totalorder %s2016_s19, 0  ;;  %s157_s30 = sshll.u32 %s3344_s3, 4  ;;  %s158_s30 = int_to_ptr.vmem [resolvable:$true] %s157_s30 }
   0xd   : > { %p2044_p10 = pnand %p1600_p7, %p138_p8  ;;  %s1881_s5 = scalar_lea.vmem %s158_s30, 16 }
   0xe   : > { %p1882_p13 = scmp.ne.s32.totalorder %s158_s30, %s1881_s5  ;;  %p1889_p3 = scmp.lt.s32.totalorder %s158_s30, %s158_s30 }
   0xf   : > { %p1686_p11 = pneg %p2044_p10  ;;  %p1890_p4 = scmp.lt.s32.totalorder %s1881_s5, %s1881_s5 }
  0x11   : > { %p1687_p12 = pnand %p1694_p9, %p1686_p11  ;;  %p1891_p7 = por %p1890_p4, %p1889_p3 }
  0x13   : > { %p1883_p0 = pneg %p1687_p12 }
  0x15   : > { %p1884_p1 = pnand %p1883_p0, %p1882_p13 }
  0x17   : > { %p1885_p2 = pneg %p1884_p1 }
  0x19   : > { %p1892_p8 = pnand %p1891_p7, %p1885_p2 }
  0x1b   : > { %1895 = shalt.err (!%p1892_p8)
}
  0x1c   : > { %s1964_s6 = smov [#allocation2]   ;;  %179 = sbr.rel (%p2044_p10) target bundleno = 634 (0x27a), region = 36 }
  0x1d   : > { %1689 = dma.vmem_to_smem (!%p1687_p12), %s158_s30, 16, %s1964_s6, [#allocation4]  }
  0x23   : > { %1941 = dma.done.wait (%p1694_p9), [#allocation4], 16  }
  0x24   : > { %1943 = vsyncadd (%p1694_p9), [#allocation4], 4294967280 }
  0x25   : > { %185 = sfence }
  0x26   : > { %v215_v0 = vld [vmem:[%s3342_s1 + $0x10] sm:$0xff]  ;;  %v213_v1 = vld [vmem:[%s3342_s1] sm:$0xff]  ;;  %v1965_v2 = vmov 1   ;;  %v214_v4 = vld [vmem:[%s3342_s1 + $0x8] sm:$0xff]  ;;  %v1966_v7 = vmov 0   ;;  %s1606_s5 = sshll.u32 %s2016_s19, 2  ;;  %v3346_v18 = vlaneseq }
  0x27   : > { %1736 = vset.pattern.permute.xlu0 %v1965_v2  ;;  %1734 = vset.pattern.permute.xlu1 %v1965_v2  ;;  %v219_v3 = vld [vmem:[%s3342_s1 + $0x30] sm:$0xff]  ;;  %v216_v6 = vld [vmem:[%s3342_s1 + $0x18] sm:$0xff]  ;;  %v217_v8 = vld [vmem:[%s3342_s1 + $0x20] sm:$0xff]  ;;  %p207_p9 = scmp.lt.s32.totalorder %s1606_s5, 7  ;;  %s1608_s12 = sld [smem:[#allocation2 + $0x1]] }
  0x28   : > { %483 = vperm.xlu0 %1736, %v215_v0   ;;  %475 = vperm.xlu1 %1734, %v213_v1   ;;  %v223_v5 = vld [vmem:[%s3342_s1 + $0x50] sm:$0xff]  ;;  %v218_v9 = vld [vmem:[%s3342_s1 + $0x28] sm:$0xff]  ;;  %v220_v11 = vld [vmem:[%s3342_s1 + $0x38] sm:$0xff]  ;;  %v2121_v19 = vshrl.u32 %v3346_v18, 7  ;;  %s1609_s13 = sld [smem:[#allocation2 + $0x2]]  ;;  %s1279_s14 = sld [smem:[#allocation2]] }
  0x29   : > { %v222_v10 = vld [vmem:[%s3342_s1 + $0x48] sm:$0xff]  ;;  %v221_v13 = vld [vmem:[%s3342_s1 + $0x40] sm:$0xff]  ;;  %v227_v14 = vld [vmem:[%s3342_s1 + $0x70] sm:$0xff]  ;;  %s3424_s5 = smov (!%p207_p9, %s1606_s5), 7  ;;  %s203_s20 = sand.u32 1, %s1954_s16  }
  0x2a   : > { %v226_v12 = vld [vmem:[%s3342_s1 + $0x68] sm:$0xff]  ;;  %v224_v15 = vld [vmem:[%s3342_s1 + $0x58] sm:$0xff]  ;;  %v225_v16 = vld [vmem:[%s3342_s1 + $0x60] sm:$0xff]  ;;  %s1607_s6 = sshll.u32 %s3424_s5, 1  ;;  %3372 = vst [vmem:[#allocation8_spill] sm:$0xff] %v2121_v19  ;;  %v2129_v20 = vsub.s32 1, %v2121_v19 }
  0x2b   : > { %v228_v17 = vld [vmem:[%s3342_s1 + $0x78] sm:$0xff]  ;;  %s2126_s9 = scalar_lea.vmem %s3341_s0, %s1607_s6  ;;  %v3350_v21 = vsub.s32 3, %v2121_v19  ;;  %v3348_v22 = vsub.s32 5, %v2121_v19  ;;  %v3347_v23 = vsub.s32 7, %v2121_v19  ;;  %v2136_v25 = vsub.s32 0, %v2121_v19  ;;  %s1605_s22 = sshll.u32 %s203_s20, 2 }
  0x2c   : > { %499 = vperm.xlu0 %1736, %v219_v3   ;;  %479 = vperm.xlu1 %1734, %v214_v4   ;;  %3373 = vst [vmem:[#allocation9_spill] sm:$0xff] %v2129_v20  ;;  %v212_v24 = vld [vmem:[%s2126_s9] sm:$0xff]  ;;  %v3352_v32 = vsub.s32 2, %v2121_v19  ;;  %v3351_v33 = vsub.s32 4, %v2121_v19  ;;  %v3349_v34 = vsub.s32 6, %v2121_v19  ;;  %s1615_s23 = sshll.u32 %s2016_s19, 6 }
  0x2d   : > { %3374 = vst [vmem:[#allocation10_spill] sm:$0xff] %v2136_v25  ;;  %v541_v26 = vrot.slane %v212_v24, %v2129_v20  ;;  %v545_v27 = vrot.slane %v212_v24, %v3350_v21  ;;  %v549_v28 = vrot.slane %v212_v24, %v3348_v22  ;;  %v553_v29 = vrot.slane %v212_v24, %v3347_v23  ;;  %s205_s27 = scalar_lea.vmem [#allocation5], %s1605_s22  ;;  %s3299_s5 = scalar_lea.hbm %s3345_s4, %s1615_s23 }
  0x2e   : > { %v313_v35 = vrot.slane %v212_v24, %v2136_v25  ;;  %v317_v42 = vrot.slane %v212_v24, %v3352_v32  ;;  %v321_v43 = vrot.slane %v212_v24, %v3351_v33  ;;  %v325_v44 = vrot.slane %v212_v24, %v3349_v34  ;;  %s1528_s28 = sshll.u32 %s205_s27, 4  ;;  %s1514_s6 = scalar_lea.sflag [#allocation3], %s203_s20  ;;  %s3301_s28 = int_to_ptr.vmem [resolvable:$true] %s1528_s28 }
  0x2f   : > { %v2150_v36 = vrot.slane %v541_v26, %v2129_v20  ;;  %v2153_v37 = vrot.slane %v545_v27, %v2129_v20  ;;  %v2156_v38 = vrot.slane %v549_v28, %v2129_v20  ;;  %v2159_v39 = vrot.slane %v553_v29, %v2129_v20  ;;  %s1896_s7 = scalar_lea.vmem %s3301_s28, 64  ;;  %s1969_s19 = smov [#allocation5]  }
  0x30   : > { %515 = vperm.xlu0 %1736, %v223_v5   ;;  %1735 = vset.pattern.permute.xlu1 %v1966_v7  ;;  %v2168_v45 = vrot.slane %v313_v35, %v2136_v25  ;;  %v2176_v52 = vrot.slane %v317_v42, %v2136_v25  ;;  %v2179_v53 = vrot.slane %v321_v43, %v2136_v25  ;;  %p1897_p10 = scmp.ne.s32.totalorder %s3301_s28, %s1896_s7  ;;  %s1900_s8 = sshll.u32 %s1969_s19, 4  ;;  %s1901_s8 = int_to_ptr.vmem [resolvable:$false] %s1900_s8 }
  0x31   : > { %246 = vperm.xlu1 %1735, %v216_v6   ;;  %v2182_v54 = vrot.slane %v325_v44, %v2136_v25  ;;  %p1903_p13 = scmp.lt.s32.totalorder %s3301_s28, %s1901_s8 }
  0x32   : > { %p1898_p11 = pnand %p1897_p10, %p2033_p5 }
  0x34   : > { %1745 = vset.pattern.permute.xlu0 %v1966_v7  ;;  %p1899_p12 = pneg %p1898_p11 }
  0x35   : > { %231 = vperm.xlu0 %1745, %v213_v1   ;;  %1737 = vset.pattern.permute.xlu1 %v1965_v2 }
  0x36   : > { %487 = vperm.xlu1 %1737, %v216_v6  }
  0x39   : > { %236 = vperm.xlu0 %1745, %v214_v4  }
  0x3a   : > { %1738 = vset.pattern.permute.xlu1 %v1966_v7 }
  0x3b   : > { %251 = vperm.xlu1 %1738, %v217_v8  }
  0x3d   : > { %241 = vperm.xlu0 %1745, %v215_v0  }
  0x3f   : > { %1739 = vset.pattern.permute.xlu1 %v1965_v2 }
  0x40   : > { %491 = vperm.xlu1 %1739, %v217_v8  }
  0x41   : > { %256 = vperm.xlu0 %1745, %v218_v9  }
  0x44   : > { %495 = vperm.xlu1 %1739, %v218_v9  }
  0x45   : > { %261 = vperm.xlu0 %1745, %v219_v3  }
  0x48   : > { %1740 = vset.pattern.permute.xlu1 %v1966_v7 }
  0x49   : > { %276 = vperm.xlu0 %1745, %v222_v10   ;;  %266 = vperm.xlu1 %1740, %v220_v11  }
  0x4d   : > { %281 = vperm.xlu0 %1745, %v223_v5   ;;  %1741 = vset.pattern.permute.xlu1 %v1965_v2 }
  0x4e   : > { %503 = vperm.xlu1 %1741, %v220_v11  }
  0x51   : > { %296 = vperm.xlu0 %1745, %v226_v12  }
  0x52   : > { %1742 = vset.pattern.permute.xlu1 %v1966_v7 }
  0x53   : > { %271 = vperm.xlu1 %1742, %v221_v13  }
  0x55   : > { %301 = vperm.xlu0 %1745, %v227_v14  }
  0x57   : > { %1743 = vset.pattern.permute.xlu1 %v1965_v2 }
  0x58   : > { %507 = vperm.xlu1 %1743, %v221_v13  }
  0x59   : > { %1750 = vset.pattern.permute.xlu0 %v1965_v2 }
  0x5a   : > { %531 = vperm.xlu0 %1750, %v227_v14  }
  0x5c   : > { %511 = vperm.xlu1 %1743, %v222_v10  }
  0x60   : > { %1744 = vset.pattern.permute.xlu1 %v1966_v7 }
  0x61   : > { %286 = vperm.xlu1 %1744, %v224_v15  }
  0x65   : > { %1746 = vset.pattern.permute.xlu1 %v1965_v2 }
  0x66   : > { %519 = vperm.xlu1 %1746, %v224_v15  }
  0x6a   : > { %1747 = vset.pattern.permute.xlu1 %v1966_v7 }
  0x6b   : > { %291 = vperm.xlu1 %1747, %v225_v16  }
  0x6f   : > { %1748 = vset.pattern.permute.xlu1 %v1965_v2 }
  0x70   : > { %523 = vperm.xlu1 %1748, %v225_v16  }
  0x74   : > { %527 = vperm.xlu1 %1748, %v226_v12  }
  0x78   : > { %1749 = vset.pattern.permute.xlu1 %v1966_v7 }
  0x79   : > { %306 = vperm.xlu1 %1749, %v228_v17  }
  0x7d   : > { %1751 = vset.pattern.permute.xlu1 %v1965_v2 }
  0x7e   : > { %535 = vperm.xlu1 %1751, %v228_v17  }
  0xa7   : > { %v476_v30 = vpop.permute.xlu1 %475  ;;  %v484_v31 = vpop.permute.xlu0 %483 }
  0xa8   : > { %v574_v46 = vsub.f32 %v476_v30, %v2150_v36  ;;  %v575_v47 = vsub.f32 %v476_v30, %v2153_v37  ;;  %v576_v48 = vsub.f32 %v476_v30, %v2156_v38  ;;  %v577_v49 = vsub.f32 %v476_v30, %v2159_v39 }
  0xa9   : > { %v582_v50 = vsub.f32 %v484_v31, %v2150_v36  ;;  %v583_v55 = vsub.f32 %v484_v31, %v2153_v37  ;;  %v584_v56 = vsub.f32 %v484_v31, %v2156_v38  ;;  %v585_v57 = vsub.f32 %v484_v31, %v2159_v39 }
  0xaa   : > { %v638_v0 = vmul.f32 %v574_v46, %v574_v46  ;;  %v639_v1 = vmul.f32 %v575_v47, %v575_v47  ;;  %v640_v2 = vmul.f32 %v576_v48, %v576_v48  ;;  %v641_v3 = vmul.f32 %v577_v49, %v577_v49 }
  0xab   : > { %v480_v40 = vpop.permute.xlu1 %479  ;;  %v500_v41 = vpop.permute.xlu0 %499  ;;  %v2192_v4 = vmul.f32 %v582_v50, %v582_v50  ;;  %v2197_v8 = vmul.f32 %v583_v55, %v583_v55  ;;  %v2199_v9 = vmul.f32 %v584_v56, %v584_v56  ;;  %v2201_v10 = vmul.f32 %v585_v57, %v585_v57 }
  0xac   : > { %v578_v58 = vsub.f32 %v480_v40, %v2150_v36  ;;  %v579_v60 = vsub.f32 %v480_v40, %v2153_v37  ;;  %v580_v61 = vsub.f32 %v480_v40, %v2156_v38  ;;  %v581_v62 = vsub.f32 %v480_v40, %v2159_v39 }
  0xad   : > { %v598_v63 = vsub.f32 %v500_v41, %v2150_v36  ;;  %v599_v5 = vsub.f32 %v500_v41, %v2153_v37  ;;  %v600_v6 = vsub.f32 %v500_v41, %v2156_v38  ;;  %v601_v7 = vsub.f32 %v500_v41, %v2159_v39 }
  0xae   : > { %v2203_v11 = vmul.f32 %v578_v58, %v578_v58  ;;  %v2205_v13 = vmul.f32 %v579_v60, %v579_v60  ;;  %v2207_v14 = vmul.f32 %v580_v61, %v580_v61  ;;  %v2209_v15 = vmul.f32 %v581_v62, %v581_v62 }
  0xaf   : > { %v516_v51 = vpop.permute.xlu0 %515  ;;  %v2211_v16 = vmul.f32 %v598_v63, %v598_v63  ;;  %v2217_v29 = vmul.f32 %v599_v5, %v599_v5  ;;  %v2219_v30 = vmul.f32 %v600_v6, %v600_v6  ;;  %v2221_v31 = vmul.f32 %v601_v7, %v601_v7 }
  0xb0   : > { %v247_v59 = vpop.permute.xlu1 %246  ;;  %v614_v24 = vsub.f32 %v516_v51, %v2150_v36  ;;  %v615_v26 = vsub.f32 %v516_v51, %v2153_v37  ;;  %v616_v27 = vsub.f32 %v516_v51, %v2156_v38  ;;  %v617_v28 = vsub.f32 %v516_v51, %v2159_v39 }
  0xb1   : > { %v358_v46 = vsub.f32 %v247_v59, %v2168_v45  ;;  %v359_v47 = vsub.f32 %v247_v59, %v2176_v52  ;;  %v360_v48 = vsub.f32 %v247_v59, %v2179_v53  ;;  %v361_v49 = vsub.f32 %v247_v59, %v2182_v54 }
  0xb2   : > { %v2232_v50 = vmul.f32 %v614_v24, %v614_v24  ;;  %v2234_v51 = vmul.f32 %v615_v26, %v615_v26  ;;  %v2236_v55 = vmul.f32 %v616_v27, %v616_v27  ;;  %v2238_v56 = vmul.f32 %v617_v28, %v617_v28 }
  0xb3   : > { %v423_v24 = vmul.f32 %v359_v47, %v359_v47  ;;  %v424_v26 = vmul.f32 %v360_v48, %v360_v48  ;;  %v425_v27 = vmul.f32 %v361_v49, %v361_v49 }
  0xb4   : > { %v232_v12 = vpop.permute.xlu0 %231 }
  0xb5   : > { %v488_v17 = vpop.permute.xlu1 %487  ;;  %v346_v35 = vsub.f32 %v232_v12, %v2168_v45  ;;  %v347_v40 = vsub.f32 %v232_v12, %v2176_v52  ;;  %v348_v41 = vsub.f32 %v232_v12, %v2179_v53  ;;  %v349_v42 = vsub.f32 %v232_v12, %v2182_v54 }
  0xb6   : > { %v586_v43 = vsub.f32 %v488_v17, %v2150_v36  ;;  %v587_v60 = vsub.f32 %v488_v17, %v2153_v37  ;;  %v588_v61 = vsub.f32 %v488_v17, %v2156_v38  ;;  %v589_v62 = vsub.f32 %v488_v17, %v2159_v39 }
  0xb7   : > { %v410_v58 = vmul.f32 %v346_v35, %v346_v35  ;;  %v411_v63 = vmul.f32 %v347_v40, %v347_v40  ;;  %v412_v5 = vmul.f32 %v348_v41, %v348_v41  ;;  %v413_v6 = vmul.f32 %v349_v42, %v349_v42 }
  0xb8   : > { %v237_v44 = vpop.permute.xlu0 %236  ;;  %v650_v59 = vmul.f32 %v586_v43, %v586_v43  ;;  %v422_v12 = vmul.f32 %v358_v46, %v358_v46  ;;  %v651_v17 = vmul.f32 %v587_v60, %v587_v60  ;;  %v652_v40 = vmul.f32 %v588_v61, %v588_v61 }
  0xb9   : > { %v350_v28 = vsub.f32 %v237_v44, %v2168_v45  ;;  %v351_v18 = vsub.f32 %v237_v44, %v2176_v52  ;;  %v352_v35 = vsub.f32 %v237_v44, %v2179_v53  ;;  %v353_v23 = vsub.f32 %v237_v44, %v2182_v54 }
  0xba   : > { %v252_v57 = vpop.permute.xlu1 %251  ;;  %v2247_v22 = vadd.f32 %v638_v0, %v410_v58  ;;  %v653_v41 = vmul.f32 %v589_v62, %v589_v62  ;;  %v2249_v42 = vadd.f32 %v639_v1, %v411_v63  ;;  %v2251_v43 = vadd.f32 %v640_v2, %v412_v5 }
  0xbb   : > { %v2253_v46 = vadd.f32 %v641_v3, %v413_v6  ;;  %v2255_v47 = vadd.f32 %v650_v59, %v422_v12  ;;  %v362_v34 = vsub.f32 %v252_v57, %v2168_v45  ;;  %v363_v21 = vsub.f32 %v252_v57, %v2176_v52 }
  0xbc   : > { %v242_v7 = vpop.permute.xlu0 %241  ;;  %v364_v0 = vsub.f32 %v252_v57, %v2179_v53  ;;  %v365_v44 = vsub.f32 %v252_v57, %v2182_v54  ;;  %v414_v58 = vmul.f32 %v350_v28, %v350_v28  ;;  %v415_v60 = vmul.f32 %v351_v18, %v351_v18 }
  0xbd   : > { %3375 = vst [vmem:[#allocation11_spill] sm:$0xff] %v2255_v47  ;;  %v416_v1 = vmul.f32 %v352_v35, %v352_v35  ;;  %v417_v61 = vmul.f32 %v353_v23, %v353_v23  ;;  %v2261_v2 = vadd.f32 %v651_v17, %v423_v24  ;;  %v2263_v3 = vadd.f32 %v652_v40, %v424_v26 }
  0xbe   : > { %v2265_v62 = vadd.f32 %v653_v41, %v425_v27  ;;  %v354_v63 = vsub.f32 %v242_v7, %v2168_v45  ;;  %v355_v5 = vsub.f32 %v242_v7, %v2176_v52  ;;  %v356_v6 = vsub.f32 %v242_v7, %v2179_v53 }
  0xbf   : > { %v492_v48 = vpop.permute.xlu1 %491  ;;  %3376 = vst [vmem:[#allocation12_spill] sm:$0xff] %v2261_v2  ;;  %3377 = vst [vmem:[#allocation13_spill] sm:$0xff] %v2263_v3  ;;  %v357_v59 = vsub.f32 %v242_v7, %v2182_v54  ;;  %v426_v12 = vmul.f32 %v362_v34, %v362_v34  ;;  %v427_v18 = vmul.f32 %v363_v21, %v363_v21  ;;  %1752 = vrsqrt.f32 %v2249_v42 }
  0xc0   : > { %v257_v49 = vpop.permute.xlu0 %256  ;;  %3378 = vst [vmem:[#allocation14_spill] sm:$0xff] %v2265_v62  ;;  %v590_v57 = vsub.f32 %v492_v48, %v2150_v36  ;;  %v428_v28 = vmul.f32 %v364_v0, %v364_v0  ;;  %v429_v23 = vmul.f32 %v365_v44, %v365_v44  ;;  %v2273_v26 = vadd.f32 %v2203_v11, %v414_v58 }
  0xc1   : > { %v2276_v27 = vadd.f32 %v2205_v13, %v415_v60  ;;  %v2279_v35 = vadd.f32 %v2207_v14, %v416_v1  ;;  %v2282_v17 = vadd.f32 %v2209_v15, %v417_v61  ;;  %v418_v40 = vmul.f32 %v354_v63, %v354_v63 }
  0xc2   : > { %v591_v34 = vsub.f32 %v492_v48, %v2153_v37  ;;  %v592_v21 = vsub.f32 %v492_v48, %v2156_v38  ;;  %v593_v41 = vsub.f32 %v492_v48, %v2159_v39  ;;  %v419_v0 = vmul.f32 %v355_v5, %v355_v5 }
  0xc3   : > { %3379 = vst [vmem:[#allocation15_spill] sm:$0xff] %v2279_v35  ;;  %v496_v7 = vpop.permute.xlu1 %495  ;;  %v420_v11 = vmul.f32 %v356_v6, %v356_v6  ;;  %v421_v44 = vmul.f32 %v357_v59, %v357_v59  ;;  %v654_v58 = vmul.f32 %v590_v57, %v590_v57  ;;  %v366_v13 = vsub.f32 %v257_v49, %v2168_v45 }
  0xc4   : > { %v262_v24 = vpop.permute.xlu0 %261  ;;  %v367_v14 = vsub.f32 %v257_v49, %v2176_v52  ;;  %v368_v60 = vsub.f32 %v257_v49, %v2179_v53  ;;  %v594_v15 = vsub.f32 %v496_v7, %v2150_v36  ;;  %v369_v1 = vsub.f32 %v257_v49, %v2182_v54 }
  0xc5   : > { %v595_v61 = vsub.f32 %v496_v7, %v2153_v37  ;;  %v596_v63 = vsub.f32 %v496_v7, %v2156_v38  ;;  %v597_v48 = vsub.f32 %v496_v7, %v2159_v39  ;;  %v655_v5 = vmul.f32 %v591_v34, %v591_v34 }
  0xc6   : > { %v656_v6 = vmul.f32 %v592_v21, %v592_v21  ;;  %v657_v59 = vmul.f32 %v593_v41, %v593_v41  ;;  %v370_v57 = vsub.f32 %v262_v24, %v2168_v45  ;;  %v2297_v32 = vadd.f32 %v2192_v4, %v418_v40 }
  0xc7   : > { %v371_v20 = vsub.f32 %v262_v24, %v2176_v52  ;;  %v372_v19 = vsub.f32 %v262_v24, %v2179_v53  ;;  %v373_v49 = vsub.f32 %v262_v24, %v2182_v54  ;;  %v430_v25 = vmul.f32 %v366_v13, %v366_v13 }
  0xc8   : > { %v277_v33 = vpop.permute.xlu0 %276  ;;  %3380 = vst [vmem:[#allocation16_spill] sm:$0xff] %v2297_v32  ;;  %v431_v3 = vmul.f32 %v367_v14, %v367_v14  ;;  %v432_v47 = vmul.f32 %v368_v60, %v368_v60  ;;  %v658_v62 = vmul.f32 %v594_v15, %v594_v15  ;;  %v267_v7 = vpop.permute.xlu1 %266  ;;  %v433_v34 = vmul.f32 %v369_v1, %v369_v1 }
  0xc9   : > { %v659_v21 = vmul.f32 %v595_v61, %v595_v61  ;;  %v660_v41 = vmul.f32 %v596_v63, %v596_v63  ;;  %v661_v2 = vmul.f32 %v597_v48, %v597_v48  ;;  %v2303_v35 = vadd.f32 %v2197_v8, %v419_v0 }
  0xca   : > { %v2306_v4 = vadd.f32 %v2199_v9, %v420_v11  ;;  %v2309_v40 = vadd.f32 %v2201_v10, %v421_v44  ;;  %v434_v32 = vmul.f32 %v370_v57, %v370_v57  ;;  %v2311_v24 = vadd.f32 %v654_v58, %v426_v12 }
  0xcb   : > { %v435_v13 = vmul.f32 %v371_v20, %v371_v20  ;;  %v436_v14 = vmul.f32 %v372_v19, %v372_v19  ;;  %v437_v60 = vmul.f32 %v373_v49, %v373_v49  ;;  %v2313_v15 = vadd.f32 %v655_v5, %v427_v18 }
  0xcc   : > { %v2315_v1 = vadd.f32 %v656_v6, %v428_v28  ;;  %v2317_v61 = vadd.f32 %v657_v59, %v429_v23  ;;  %v2319_v8 = vadd.f32 %v658_v62, %v430_v25  ;;  %v282_v0 = vpop.permute.xlu0 %281  ;;  %v2321_v9 = vadd.f32 %v659_v21, %v431_v3 }
  0xcd   : > { %v2323_v11 = vadd.f32 %v660_v41, %v432_v47  ;;  %v2325_v10 = vadd.f32 %v661_v2, %v433_v34  ;;  %v382_v12 = vsub.f32 %v277_v33, %v2168_v45  ;;  %v2329_v19 = vadd.f32 %v2211_v16, %v434_v32  ;;  %v504_v25 = vpop.permute.xlu1 %503 }
  0xce   : > { %v383_v20 = vsub.f32 %v277_v33, %v2176_v52  ;;  %v384_v18 = vsub.f32 %v277_v33, %v2179_v53  ;;  %v385_v28 = vsub.f32 %v277_v33, %v2182_v54  ;;  %v2335_v62 = vadd.f32 %v2217_v29, %v435_v13 }
  0xcf   : > { %3381 = vst [vmem:[#allocation17_spill] sm:$0xff] %v2329_v19  ;;  %v2338_v47 = vadd.f32 %v2219_v30, %v436_v14  ;;  %v2341_v2 = vadd.f32 %v2221_v31, %v437_v60  ;;  %v386_v3 = vsub.f32 %v282_v0, %v2168_v45  ;;  %v374_v32 = vsub.f32 %v267_v7, %v2168_v45 }
  0xd0   : > { %v387_v16 = vsub.f32 %v282_v0, %v2176_v52  ;;  %v388_v23 = vsub.f32 %v282_v0, %v2179_v53  ;;  %v389_v33 = vsub.f32 %v282_v0, %v2182_v54  ;;  %v375_v44 = vsub.f32 %v267_v7, %v2176_v52 }
  0xd1   : > { %3382 = vst [vmem:[#allocation18_spill] sm:$0xff] %v2338_v47  ;;  %v376_v29 = vsub.f32 %v267_v7, %v2179_v53  ;;  %v602_v30 = vsub.f32 %v504_v25, %v2150_v36  ;;  %v603_v58 = vsub.f32 %v504_v25, %v2153_v37  ;;  %v2352_v31 = vmul.f32 %v382_v12, %v382_v12 }
  0xd2   : > { %v2354_v63 = vmul.f32 %v383_v20, %v383_v20  ;;  %v604_v48 = vsub.f32 %v504_v25, %v2156_v38  ;;  %v605_v5 = vsub.f32 %v504_v25, %v2159_v39  ;;  %v2358_v6 = vmul.f32 %v384_v18, %v384_v18  ;;  %v297_v20 = vpop.permute.xlu0 %296 }
  0xd3   : > { %v2360_v59 = vmul.f32 %v385_v28, %v385_v28  ;;  %v377_v57 = vsub.f32 %v267_v7, %v2182_v54  ;;  %v450_v49 = vmul.f32 %v386_v3, %v386_v3  ;;  %v438_v34 = vmul.f32 %v374_v32, %v374_v32 }
  0xd4   : > { %v451_v21 = vmul.f32 %v387_v16, %v387_v16  ;;  %v452_v41 = vmul.f32 %v388_v23, %v388_v23  ;;  %v453_v13 = vmul.f32 %v389_v33, %v389_v33  ;;  %v439_v14 = vmul.f32 %v375_v44, %v375_v44  ;;  %v2379_v33 = vpop.permute.xlu1 %271 }
  0xd5   : > { %v440_v60 = vmul.f32 %v376_v29, %v376_v29  ;;  %v666_v0 = vmul.f32 %v602_v30, %v602_v30  ;;  %v667_v12 = vmul.f32 %v603_v58, %v603_v58  ;;  %v668_v47 = vmul.f32 %v604_v48, %v604_v48 }
  0xd6   : > { %v669_v19 = vmul.f32 %v605_v5, %v605_v5  ;;  %v398_v25 = vsub.f32 %v297_v20, %v2168_v45  ;;  %v441_v18 = vmul.f32 %v377_v57, %v377_v57  ;;  %v2366_v28 = vadd.f32 %v2232_v50, %v450_v49  ;;  %v3390_v57 = vld [vmem:[#allocation15_spill] sm:$0xff] }
  0xd7   : > { %v399_v7 = vsub.f32 %v297_v20, %v2176_v52  ;;  %v400_v3 = vsub.f32 %v297_v20, %v2179_v53  ;;  %v2371_v32 = vadd.f32 %v2234_v51, %v451_v21  ;;  %v2374_v16 = vadd.f32 %v2236_v55, %v452_v41 }
  0xd8   : > { %3383 = vst [vmem:[#allocation19_spill] sm:$0xff] %v2366_v28  ;;  %v2377_v23 = vadd.f32 %v2238_v56, %v453_v13  ;;  %1754 = vrsqrt.f32 %v2276_v27  ;;  %v2382_v44 = vadd.f32 %v666_v0, %v438_v34  ;;  %v2384_v50 = vadd.f32 %v667_v12, %v439_v14  ;;  %v1753_v34 = vpop.eup %1752  ;;  %v3391_v12 = vld [vmem:[#allocation12_spill] sm:$0xff] }
  0xd9   : > { %3384 = vst [vmem:[#allocation20_spill] sm:$0xff] %v2371_v32  ;;  %3385 = vst [vmem:[#allocation21_spill] sm:$0xff] %v2374_v16  ;;  %v2387_v29 = vsub.f32 %v297_v20, %v2182_v54  ;;  %1756 = vrsqrt.f32 %v2253_v46  ;;  %v2390_v51 = vadd.f32 %v668_v47, %v440_v60  ;;  %v2392_v55 = vadd.f32 %v669_v19, %v441_v18 }
  0xda   : > { %3386 = vst [vmem:[#allocation22_spill] sm:$0xff] %v2377_v23  ;;  %v2394_v30 = vmul.f32 %v398_v25, %v398_v25  ;;  %1758 = vrsqrt.f32 %v2282_v17  ;;  %v2397_v56 = vmul.f32 %v399_v7, %v399_v7  ;;  %v2399_v58 = vmul.f32 %v400_v3, %v400_v3 }
  0xdb   : > { %v2403_v48 = vsub.f32 %v2379_v33, %v2168_v45  ;;  %1760 = vrsqrt.f32 %v2247_v22  ;;  %vm775_vm0 = vcmp.eq.f32.partialorder %v2249_v42, inf  ;;  %vm777_vm1 = vcmp.eq.f32.partialorder %v2249_v42, 0.0 }
  0xdc   : > { %3387 = vst [vmem:[#allocation23_spill] sm:$0xff] %v2394_v30  ;;  %3388 = vst [vmem:[#allocation24_spill] sm:$0xff] %v2397_v56  ;;  %v778_v19 = vand.u32 2147483648, %v2249_v42  ;;  %1762 = vrsqrt.f32 %v2273_v26  ;;  %vm803_vm2 = vcmp.eq.f32.partialorder %v2276_v27, inf  ;;  %vm805_vm3 = vcmp.eq.f32.partialorder %v2276_v27, 0.0  ;;  %v3392_v56 = vld [vmem:[#allocation14_spill] sm:$0xff] }
  0xdd   : > { %3389 = vst [vmem:[#allocation25_spill] sm:$0xff] %v2399_v58  ;;  %v806_v47 = vand.u32 2147483648, %v2276_v27  ;;  %1764 = vrsqrt.f32 %v2251_v43  ;;  %vm789_vm4 = vcmp.eq.f32.partialorder %v2253_v46, inf  ;;  %vm791_vm5 = vcmp.eq.f32.partialorder %v2253_v46, 0.0 }
  0xde   : > { %v792_v5 = vand.u32 2147483648, %v2253_v46  ;;  %1766 = vrsqrt.f32 %v3390_v57  ;;  %vm817_vm6 = vcmp.eq.f32.partialorder %v2282_v17, inf  ;;  %vm819_vm7 = vcmp.eq.f32.partialorder %v2282_v17, 0.0 }
  0xdf   : > { %v820_v49 = vand.u32 2147483648, %v2282_v17  ;;  %vm768_vm8 = vcmp.eq.f32.partialorder %v2247_v22, inf  ;;  %vm770_vm9 = vcmp.eq.f32.partialorder %v2247_v22, 0.0  ;;  %v771_v21 = vand.u32 2147483648, %v2247_v22 }
  0xe0   : > { %vm796_vm10 = vcmp.eq.f32.partialorder %v2273_v26, inf  ;;  %1768 = vrsqrt.f32 %v2303_v35  ;;  %v774_v41 = vmul.f32 %v1753_v34, %v2249_v42  ;;  %vm798_vm11 = vcmp.eq.f32.partialorder %v2273_v26, 0.0 }
  0xe1   : > { %v799_v13 = vand.u32 2147483648, %v2273_v26  ;;  %v785_v60 = vand.u32 2147483648, %v2251_v43  ;;  %v813_v0 = vand.u32 2147483648, %v3390_v57  ;;  %1770 = vrsqrt.f32 %v3391_v12 }
  0xe2   : > { %v1755_v14 = vpop.eup %1754  ;;  %v776_v25 = vsel %vm775_vm0, %v2249_v42, %v774_v41  ;;  %vm810_vm14 = vcmp.eq.f32.partialorder %v3390_v57, inf  ;;  %vm831_vm15 = vcmp.eq.f32.partialorder %v2303_v35, inf  ;;  %1772 = vrsqrt.f32 %v2309_v40 }
  0xe3   : > { %v1757_v20 = vpop.eup %1756  ;;  %v802_v18 = vmul.f32 %v1755_v14, %v2276_v27  ;;  %v779_v3 = vsel %vm777_vm1, %v778_v19, %v776_v25  ;;  %vm812_vm13 = vcmp.eq.f32.partialorder %v3390_v57, 0.0  ;;  %vm833_vm12 = vcmp.eq.f32.partialorder %v2303_v35, 0.0 }
  0xe4   : > { %v1759_v7 = vpop.eup %1758  ;;  %v788_v34 = vmul.f32 %v1757_v20, %v2253_v46  ;;  %v834_v41 = vand.u32 2147483648, %v2303_v35  ;;  %v1215_v28 = vmul.f32 %v779_v3, %v2249_v42  ;;  %v862_v32 = vand.u32 2147483648, %v3391_v12 }
  0xe5   : > { %v1761_v16 = vpop.eup %1760  ;;  %v804_v14 = vsel %vm803_vm2, %v2276_v27, %v802_v18  ;;  %v816_v23 = vmul.f32 %v1759_v7, %v2282_v17  ;;  %vm859_vm0 = vcmp.eq.f32.partialorder %v3391_v12, inf  ;;  %1774 = vrsqrt.f32 %v3392_v56 }
  0xe6   : > { %v1763_v19 = vpop.eup %1762  ;;  %v807_v20 = vsel %vm805_vm3, %v806_v47, %v804_v14  ;;  %v790_v25 = vsel %vm789_vm4, %v2253_v46, %v788_v34  ;;  %v767_v58 = vmul.f32 %v1761_v16, %v2247_v22  ;;  %vm3393_vm1 = vcmp.eq.f32.partialorder %v2251_v43, inf }
  0xe7   : > { %v1765_v18 = vpop.eup %1764  ;;  %v1219_v42 = vmul.f32 %v807_v20, %v2276_v27  ;;  %v793_v7 = vsel %vm791_vm5, %v792_v5, %v790_v25  ;;  %v818_v47 = vsel %vm817_vm6, %v2282_v17, %v816_v23  ;;  %v795_v3 = vmul.f32 %v1763_v19, %v2273_v26 }
  0xe8   : > { %v1767_v14 = vpop.eup %1766  ;;  %v821_v16 = vsel %vm819_vm7, %v820_v49, %v818_v47  ;;  %v1217_v34 = vmul.f32 %v793_v7, %v2253_v46  ;;  %v769_v30 = vsel %vm768_vm8, %v2247_v22, %v767_v58  ;;  %v781_v27 = vmul.f32 %v1765_v18, %v2251_v43 }
  0xe9   : > { %v1616_v20 = vpack.c.bf16 %v1219_v42, %v1215_v28  ;;  %v1221_v5 = vmul.f32 %v821_v16, %v2282_v17  ;;  %v772_v23 = vsel %vm770_vm9, %v771_v21, %v769_v30  ;;  %v797_v19 = vsel %vm796_vm10, %v2273_v26, %v795_v3 }
  0xea   : > { %v1769_v25 = vpop.eup %1768  ;;  %v800_v46 = vsel %vm798_vm11, %v799_v13, %v797_v19  ;;  %v1214_v49 = vmul.f32 %v772_v23, %v2247_v22  ;;  %v783_v58 = vsel %vm3393_vm1, %v2251_v43, %v781_v27  ;;  %v809_v28 = vmul.f32 %v1767_v14, %v3390_v57 }
  0xeb   : > { %1617 = vmatprep.subr.bf16.mxu0 %v1616_v20  ;;  %v1648_v17 = vpack.c.bf16 %v1221_v5, %v1217_v34  ;;  %v1218_v30 = vmul.f32 %v800_v46, %v2273_v26  ;;  %vm3394_vm2 = vcmp.eq.f32.partialorder %v2251_v43, 0.0  ;;  %v830_v18 = vmul.f32 %v1769_v25, %v2303_v35  ;;  %v1771_v42 = vpop.eup %1770  ;;  %v508_v5 = vpop.permute.xlu1 %507 }
  0xec   : > { %v786_v21 = vsel %vm3394_vm2, %v785_v60, %v783_v58  ;;  %v811_v22 = vsel %vm810_vm14, %v3390_v57, %v809_v28  ;;  %vm845_vm3 = vcmp.eq.f32.partialorder %v2309_v40, inf  ;;  %vm847_vm4 = vcmp.eq.f32.partialorder %v2309_v40, 0.0  ;;  %v1773_v7 = vpop.eup %1772 }
  0xed   : > { %v848_v13 = vand.u32 2147483648, %v2309_v40  ;;  %1649 = vmatprep.subr.bf16.mxu1 %v1648_v17  ;;  %v1618_v47 = vpack.c.bf16 %v1218_v30, %v1214_v49  ;;  %v814_v26 = vsel %vm812_vm13, %v813_v0, %v811_v22  ;;  %v832_v60 = vsel %vm831_vm15, %v2303_v35, %v830_v18  ;;  %v302_v17 = vpop.permute.xlu0 %301  ;;  %v3395_v18 = vld [vmem:[#allocation16_spill] sm:$0xff] }
  0xee   : > { %v858_v3 = vmul.f32 %v1771_v42, %v3391_v12  ;;  %v1216_v14 = vmul.f32 %v786_v21, %v2251_v43  ;;  %v1220_v16 = vmul.f32 %v814_v26, %v3390_v57  ;;  %v835_v34 = vsel %vm833_vm12, %v834_v41, %v832_v60 }
  0xef   : > { %v844_v27 = vmul.f32 %v1773_v7, %v2309_v40  ;;  %1619 = vmatpush1.bf16.msra.mxu0 %v1618_v47  ;;  %vm861_vm5 = vcmp.eq.f32.partialorder %v3391_v12, 0.0  ;;  %v1223_v20 = vmul.f32 %v835_v34, %v2303_v35  ;;  %vm873_vm6 = vcmp.eq.f32.partialorder %v3392_v56, inf  ;;  %v1775_v43 = vpop.eup %1774  ;;  %v3396_v34 = vld [vmem:[#allocation11_spill] sm:$0xff] }
  0xf0   : > { %v860_v0 = vsel %vm859_vm0, %v3391_v12, %v858_v3  ;;  %v1650_v23 = vpack.c.bf16 %v1220_v16, %v1216_v14  ;;  %vm875_vm7 = vcmp.eq.f32.partialorder %v3392_v56, 0.0  ;;  %v872_v46 = vmul.f32 %v1775_v43, %v3392_v56 }
  0xf1   : > { %v863_v57 = vsel %vm861_vm5, %v862_v32, %v860_v0  ;;  %v846_v41 = vsel %vm845_vm3, %v2309_v40, %v844_v27  ;;  %v876_v35 = vand.u32 2147483648, %v3392_v56  ;;  %v606_v49 = vsub.f32 %v508_v5, %v2150_v36 }
  0xf2   : > { %v1227_v19 = vmul.f32 %v863_v57, %v3391_v12  ;;  %v849_v25 = vsel %vm847_vm4, %v848_v13, %v846_v41  ;;  %1651 = vmatpush1.bf16.msra.mxu1 %v1650_v23  ;;  %v607_v32 = vsub.f32 %v508_v5, %v2153_v37  ;;  %v608_v58 = vsub.f32 %v508_v5, %v2156_v38 }
  0xf3   : > { %v609_v28 = vsub.f32 %v508_v5, %v2159_v39  ;;  %v874_v12 = vsel %vm873_vm6, %v3392_v56, %v872_v46  ;;  %v1225_v21 = vmul.f32 %v849_v25, %v2309_v40  ;;  %1776 = vrsqrt.f32 %v3395_v18  ;;  %v532_v25 = vpop.permute.xlu0 %531 }
  0xf4   : > { %v1620_v30 = vpack.c.bf16 %v1227_v19, %v1223_v20  ;;  %v379_v42 = vsub.f32 %v2379_v33, %v2176_v52  ;;  %v380_v22 = vsub.f32 %v2379_v33, %v2179_v53  ;;  %v381_v13 = vsub.f32 %v2379_v33, %v2182_v54 }
  0xf5   : > { %v877_v7 = vsel %vm875_vm7, %v876_v35, %v874_v12  ;;  %v402_v47 = vsub.f32 %v302_v17, %v2168_v45  ;;  %v403_v26 = vsub.f32 %v302_v17, %v2176_v52  ;;  %v404_v40 = vsub.f32 %v302_v17, %v2179_v53 }
  0xf6   : > { %1621 = vmatprep.subr.bf16.mxu0 %v1620_v30  ;;  %v1229_v60 = vmul.f32 %v877_v7, %v3392_v56  ;;  %v405_v3 = vsub.f32 %v302_v17, %v2182_v54  ;;  %v670_v14 = vmul.f32 %v606_v49, %v606_v49  ;;  %v671_v16 = vmul.f32 %v607_v32, %v607_v32  ;;  %v3397_v56 = vld [vmem:[#allocation13_spill] sm:$0xff] }
  0xf7   : > { %1778 = vrsqrt.f32 %v3396_v34  ;;  %v672_v33 = vmul.f32 %v608_v58, %v608_v58  ;;  %v673_v0 = vmul.f32 %v609_v28, %v609_v28  ;;  %v2550_v20 = vmul.f32 %v2387_v29, %v2387_v29 }
  0xf8   : > { %v1652_v27 = vpack.c.bf16 %v1229_v60, %v1225_v21  ;;  %1780 = vrsqrt.f32 %v2306_v4  ;;  %v442_v5 = vmul.f32 %v2403_v48, %v2403_v48  ;;  %v443_v43 = vmul.f32 %v379_v42, %v379_v42  ;;  %v512_v21 = vpop.permute.xlu1 %511 }
  0xf9   : > { %1782 = vrsqrt.f32 %v3397_v56  ;;  %v444_v23 = vmul.f32 %v380_v22, %v380_v22  ;;  %v445_v57 = vmul.f32 %v381_v13, %v381_v13  ;;  %v466_v41 = vmul.f32 %v402_v47, %v402_v47 }
  0xfa   : > { %v467_v19 = vmul.f32 %v403_v26, %v403_v26  ;;  %1653 = vmatprep.subr.bf16.mxu1 %v1652_v27  ;;  %v2555_v46 = vmul.f32 %v404_v40, %v404_v40  ;;  %v469_v35 = vmul.f32 %v405_v3, %v405_v3  ;;  %v2557_v49 = vadd.f32 %v670_v14, %v442_v5 }
  0xfb   : > { %v2559_v32 = vadd.f32 %v671_v16, %v443_v43  ;;  %v2561_v29 = vadd.f32 %v672_v33, %v444_v23  ;;  %v2563_v58 = vadd.f32 %v673_v0, %v445_v57  ;;  %vm824_vm8 = vcmp.eq.f32.partialorder %v3395_v18, inf }
  0xfc   : > { %vm826_vm9 = vcmp.eq.f32.partialorder %v3395_v18, 0.0  ;;  %v827_v48 = vand.u32 2147483648, %v3395_v18  ;;  %vm852_vm10 = vcmp.eq.f32.partialorder %v3396_v34, inf  ;;  %vm854_vm11 = vcmp.eq.f32.partialorder %v3396_v34, 0.0 }
  0xfd   : > { %v630_v28 = vsub.f32 %v532_v25, %v2150_v36  ;;  %v1777_v17 = vpop.eup %1776  ;;  %v855_v30 = vand.u32 2147483648, %v3396_v34  ;;  %vm838_vm12 = vcmp.eq.f32.partialorder %v2306_v4, inf  ;;  %vm840_vm13 = vcmp.eq.f32.partialorder %v2306_v4, 0.0 }
  0xfe   : > { %v631_v12 = vsub.f32 %v532_v25, %v2153_v37  ;;  %v823_v42 = vmul.f32 %v1777_v17, %v3395_v18  ;;  %v841_v22 = vand.u32 2147483648, %v2306_v4  ;;  %vm866_vm14 = vcmp.eq.f32.partialorder %v3397_v56, inf }
  0xff   : > { %v632_v13 = vsub.f32 %v532_v25, %v2156_v38  ;;  %vm868_vm15 = vcmp.eq.f32.partialorder %v3397_v56, 0.0  ;;  %v869_v7 = vand.u32 2147483648, %v3397_v56  ;;  %v633_v47 = vsub.f32 %v532_v25, %v2159_v39 }
 0x100   : > { %1784 = vrsqrt.f32 %v2313_v15  ;;  %v825_v40 = vsel %vm824_vm8, %v3395_v18, %v823_v42  ;;  %v694_v60 = vmul.f32 %v630_v28, %v630_v28  ;;  %v610_v3 = vsub.f32 %v512_v21, %v2150_v36 }
 0x101   : > { %v1779_v26 = vpop.eup %1778  ;;  %v611_v14 = vsub.f32 %v512_v21, %v2153_v37  ;;  %v828_v27 = vsel %vm826_vm9, %v827_v48, %v825_v40  ;;  %v695_v0 = vmul.f32 %v631_v12, %v631_v12  ;;  %1786 = vrsqrt.f32 %v2321_v9 }
 0x102   : > { %v1781_v16 = vpop.eup %1780  ;;  %v851_v33 = vmul.f32 %v1779_v26, %v3396_v34  ;;  %v2593_v23 = vmul.f32 %v632_v13, %v632_v13  ;;  %v612_v57 = vsub.f32 %v512_v21, %v2156_v38  ;;  %v613_v25 = vsub.f32 %v512_v21, %v2159_v39 }
 0x103   : > { %v1783_v5 = vpop.eup %1782  ;;  %v837_v43 = vmul.f32 %v1781_v16, %v2306_v4  ;;  %v1222_v48 = vmul.f32 %v828_v27, %v3395_v18  ;;  %1788 = vrsqrt.f32 %v2317_v61  ;;  %v697_v13 = vmul.f32 %v633_v47, %v633_v47 }
 0x104   : > { %v853_v28 = vsel %vm852_vm10, %v3396_v34, %v851_v33  ;;  %v865_v17 = vmul.f32 %v1783_v5, %v3397_v56  ;;  %v2608_v26 = vmul.f32 %v610_v3, %v610_v3  ;;  %1790 = vrsqrt.f32 %v2325_v10 }
 0x105   : > { %v856_v12 = vsel %vm854_vm11, %v855_v30, %v853_v28  ;;  %v839_v42 = vsel %vm838_vm12, %v2306_v4, %v837_v43  ;;  %v2620_v27 = vadd.f32 %v694_v60, %v466_v41  ;;  %v2622_v47 = vmul.f32 %v611_v14, %v611_v14 }
 0x106   : > { %v1226_v21 = vmul.f32 %v856_v12, %v3396_v34  ;;  %v842_v40 = vsel %vm840_vm13, %v841_v22, %v839_v42  ;;  %v867_v18 = vsel %vm866_vm14, %v3397_v56, %v865_v17  ;;  %v2625_v33 = vadd.f32 %v695_v0, %v467_v19 }
 0x107   : > { %v870_v30 = vsel %vm868_vm15, %v869_v7, %v867_v18  ;;  %v1224_v16 = vmul.f32 %v842_v40, %v2306_v4  ;;  %1792 = vrsqrt.f32 %v2311_v24  ;;  %v2628_v22 = vadd.f32 %v697_v13, %v469_v35 }
 0x108   : > { %v1622_v3 = vpack.c.bf16 %v1226_v21, %v1222_v48  ;;  %v1228_v34 = vmul.f32 %v870_v30, %v3397_v56  ;;  %v2630_v5 = vmul.f32 %v612_v57, %v612_v57  ;;  %v2632_v43 = vmul.f32 %v613_v25, %v613_v25  ;;  %v287_v48 = vpop.permute.xlu1 %286 }
 0x109   : > { %1794 = vrsqrt.f32 %v2319_v8  ;;  %vm887_vm0 = vcmp.eq.f32.partialorder %v2313_v15, inf  ;;  %vm889_vm1 = vcmp.eq.f32.partialorder %v2313_v15, 0.0  ;;  %v890_v56 = vand.u32 2147483648, %v2313_v15 }
 0x10a   : > { %v1785_v4 = vpop.eup %1784  ;;  %1623 = vmatpush1.bf16.msra.mxu0 %v1622_v3  ;;  %v1654_v41 = vpack.c.bf16 %v1228_v34, %v1224_v16  ;;  %vm915_vm2 = vcmp.eq.f32.partialorder %v2321_v9, inf  ;;  %vm917_vm3 = vcmp.eq.f32.partialorder %v2321_v9, 0.0  ;;  %1796 = vrsqrt.f32 %v2315_v1 }
 0x10b   : > { %v886_v19 = vmul.f32 %v1785_v4, %v2313_v15  ;;  %v1787_v35 = vpop.eup %1786  ;;  %v918_v7 = vand.u32 2147483648, %v2321_v9  ;;  %vm901_vm4 = vcmp.eq.f32.partialorder %v2317_v61, inf  ;;  %vm903_vm5 = vcmp.eq.f32.partialorder %v2317_v61, 0.0 }
 0x10c   : > { %1655 = vmatpush1.bf16.msra.mxu1 %v1654_v41  ;;  %1798 = vrsqrt.f32 %v2323_v11  ;;  %v914_v14 = vmul.f32 %v1787_v35, %v2321_v9  ;;  %v904_v0 = vand.u32 2147483648, %v2317_v61  ;;  %vm929_vm6 = vcmp.eq.f32.partialorder %v2325_v10, inf }
 0x10d   : > { %v888_v60 = vsel %vm887_vm0, %v2313_v15, %v886_v19  ;;  %v1789_v57 = vpop.eup %1788  ;;  %vm931_vm7 = vcmp.eq.f32.partialorder %v2325_v10, 0.0  ;;  %v932_v28 = vand.u32 2147483648, %v2325_v10  ;;  %vm880_vm8 = vcmp.eq.f32.partialorder %v2311_v24, inf }
 0x10e   : > { %v891_v25 = vsel %vm889_vm1, %v890_v56, %v888_v60  ;;  %v916_v17 = vsel %vm915_vm2, %v2321_v9, %v914_v14  ;;  %v900_v12 = vmul.f32 %v1789_v57, %v2317_v61  ;;  %vm882_vm9 = vcmp.eq.f32.partialorder %v2311_v24, 0.0  ;;  %v1791_v13 = vpop.eup %1790  ;;  %v520_v14 = vpop.permute.xlu1 %519 }
 0x10f   : > { %v883_v42 = vand.u32 2147483648, %v2311_v24  ;;  %v919_v21 = vsel %vm917_vm3, %v918_v7, %v916_v17  ;;  %vm908_vm10 = vcmp.eq.f32.partialorder %v2319_v8, inf  ;;  %vm910_vm11 = vcmp.eq.f32.partialorder %v2319_v8, 0.0 }
 0x110   : > { %v911_v40 = vand.u32 2147483648, %v2319_v8  ;;  %v1231_v18 = vmul.f32 %v891_v25, %v2313_v15  ;;  %v1235_v30 = vmul.f32 %v919_v21, %v2321_v9  ;;  %v902_v16 = vsel %vm901_vm4, %v2317_v61, %v900_v12 }
 0x111   : > { %v928_v3 = vmul.f32 %v1791_v13, %v2325_v10  ;;  %v1793_v34 = vpop.eup %1792  ;;  %v905_v4 = vsel %vm903_vm5, %v904_v0, %v902_v16  ;;  %vm894_vm12 = vcmp.eq.f32.partialorder %v2315_v1, inf  ;;  %vm896_vm13 = vcmp.eq.f32.partialorder %v2315_v1, 0.0 }
 0x112   : > { %v897_v41 = vand.u32 2147483648, %v2315_v1  ;;  %v1624_v15 = vpack.c.bf16 %v1235_v30, %v1231_v18  ;;  %v879_v19 = vmul.f32 %v1793_v34, %v2311_v24  ;;  %vm922_vm14 = vcmp.eq.f32.partialorder %v2323_v11, inf }
 0x113   : > { %v1795_v56 = vpop.eup %1794  ;;  %v930_v9 = vsel %vm929_vm6, %v2325_v10, %v928_v3  ;;  %vm924_vm15 = vcmp.eq.f32.partialorder %v2323_v11, 0.0  ;;  %v925_v60 = vand.u32 2147483648, %v2323_v11  ;;  %v1233_v57 = vmul.f32 %v905_v4, %v2317_v61 }
 0x114   : > { %v933_v35 = vsel %vm931_vm7, %v932_v28, %v930_v9  ;;  %v907_v7 = vmul.f32 %v1795_v56, %v2319_v8  ;;  %v1797_v0 = vpop.eup %1796  ;;  %1625 = vmatprep.subr.bf16.mxu0 %v1624_v15  ;;  %v881_v17 = vsel %vm880_vm8, %v2311_v24, %v879_v19  ;;  %v390_v12 = vsub.f32 %v287_v48, %v2168_v45 }
 0x115   : > { %v1237_v25 = vmul.f32 %v933_v35, %v2325_v10  ;;  %v884_v13 = vsel %vm882_vm9, %v883_v42, %v881_v17  ;;  %v893_v18 = vmul.f32 %v1797_v0, %v2315_v1  ;;  %v391_v61 = vsub.f32 %v287_v48, %v2176_v52 }
 0x116   : > { %v1799_v28 = vpop.eup %1798  ;;  %v909_v21 = vsel %vm908_vm10, %v2319_v8, %v907_v7  ;;  %v618_v3 = vsub.f32 %v520_v14, %v2150_v36  ;;  %v1230_v34 = vmul.f32 %v884_v13, %v2311_v24  ;;  %v619_v56 = vsub.f32 %v520_v14, %v2153_v37 }
 0x117   : > { %v1656_v30 = vpack.c.bf16 %v1237_v25, %v1233_v57  ;;  %v912_v10 = vsel %vm910_vm11, %v911_v40, %v909_v21  ;;  %v921_v16 = vmul.f32 %v1799_v28, %v2323_v11  ;;  %v895_v4 = vsel %vm894_vm12, %v2315_v1, %v893_v18  ;;  %v2766_v21 = vpop.permute.xlu1 %291 }
 0x118   : > { %v1234_v42 = vmul.f32 %v912_v10, %v2319_v8  ;;  %v898_v15 = vsel %vm896_vm13, %v897_v41, %v895_v4  ;;  %v392_v9 = vsub.f32 %v287_v48, %v2179_v53  ;;  %1800 = vrsqrt.f32 %v2335_v62 }
 0x119   : > { %1657 = vmatprep.subr.bf16.mxu1 %v1656_v30  ;;  %v923_v40 = vsel %vm922_vm14, %v2323_v11, %v921_v16  ;;  %v393_v19 = vsub.f32 %v287_v48, %v2182_v54  ;;  %v620_v35 = vsub.f32 %v520_v14, %v2156_v38  ;;  %v1232_v7 = vmul.f32 %v898_v15, %v2315_v1 }
 0x11a   : > { %v1626_v24 = vpack.c.bf16 %v1234_v42, %v1230_v34  ;;  %v926_v8 = vsel %vm924_vm15, %v925_v60, %v923_v40  ;;  %v621_v0 = vsub.f32 %v520_v14, %v2159_v39  ;;  %1802 = vrsqrt.f32 %v2384_v50 }
 0x11b   : > { %v1236_v41 = vmul.f32 %v926_v8, %v2323_v11  ;;  %v2727_v57 = vadd.f32 %v2608_v26, %v2352_v31  ;;  %v682_v25 = vmul.f32 %v618_v3, %v618_v3  ;;  %v683_v17 = vmul.f32 %v619_v56, %v619_v56 }
 0x11c   : > { %1627 = vmatpush1.bf16.msra.mxu0 %v1626_v24  ;;  %1804 = vrsqrt.f32 %v2341_v2  ;;  %v2732_v48 = vadd.f32 %v2622_v47, %v2354_v63  ;;  %v2736_v1 = vadd.f32 %v2630_v5, %v2358_v6  ;;  %v2740_v11 = vadd.f32 %v2632_v43, %v2360_v59  ;;  %v3398_v6 = vld [vmem:[#allocation17_spill] sm:$0xff] }
 0x11d   : > { %v1658_v60 = vpack.c.bf16 %v1236_v41, %v1232_v7  ;;  %v454_v31 = vmul.f32 %v390_v12, %v390_v12  ;;  %v455_v26 = vmul.f32 %v391_v61, %v391_v61  ;;  %v2742_v14 = vmul.f32 %v392_v9, %v392_v9  ;;  %v3399_v12 = vld [vmem:[#allocation18_spill] sm:$0xff]  ;;  %v524_v7 = vpop.permute.xlu1 %523 }
 0x11e   : > { %1806 = vrsqrt.f32 %v2392_v55  ;;  %v2745_v28 = vmul.f32 %v393_v19, %v393_v19  ;;  %v2747_v63 = vmul.f32 %v620_v35, %v620_v35  ;;  %v2749_v47 = vmul.f32 %v621_v0, %v621_v0 }
 0x11f   : > { %1659 = vmatpush1.bf16.msra.mxu1 %v1658_v60  ;;  %1808 = vrsqrt.f32 %v3398_v6  ;;  %v2752_v5 = vadd.f32 %v682_v25, %v454_v31  ;;  %v2754_v59 = vadd.f32 %v683_v17, %v455_v26  ;;  %vm943_vm0 = vcmp.eq.f32.partialorder %v2335_v62, inf }
 0x120   : > { %1810 = vrsqrt.f32 %v2382_v44  ;;  %vm945_vm1 = vcmp.eq.f32.partialorder %v2335_v62, 0.0  ;;  %v946_v43 = vand.u32 2147483648, %v2335_v62  ;;  %vm971_vm2 = vcmp.eq.f32.partialorder %v2384_v50, inf }
 0x121   : > { %1812 = vrsqrt.f32 %v3399_v12  ;;  %vm973_vm3 = vcmp.eq.f32.partialorder %v2384_v50, 0.0  ;;  %v974_v13 = vand.u32 2147483648, %v2384_v50  ;;  %vm957_vm4 = vcmp.eq.f32.partialorder %v2341_v2, inf }
 0x122   : > { %1814 = vrsqrt.f32 %v2390_v51  ;;  %v1801_v18 = vpop.eup %1800  ;;  %vm959_vm5 = vcmp.eq.f32.partialorder %v2341_v2, 0.0  ;;  %v960_v61 = vand.u32 2147483648, %v2341_v2  ;;  %vm985_vm6 = vcmp.eq.f32.partialorder %v2392_v55, inf }
 0x123   : > { %vm987_vm7 = vcmp.eq.f32.partialorder %v2392_v55, 0.0  ;;  %v942_v30 = vmul.f32 %v1801_v18, %v2335_v62  ;;  %v988_v10 = vand.u32 2147483648, %v2392_v55  ;;  %vm936_vm8 = vcmp.eq.f32.partialorder %v3398_v6, inf }
 0x124   : > { %vm938_vm9 = vcmp.eq.f32.partialorder %v3398_v6, 0.0  ;;  %v1803_v16 = vpop.eup %1802  ;;  %v939_v3 = vand.u32 2147483648, %v3398_v6  ;;  %vm964_vm10 = vcmp.eq.f32.partialorder %v2382_v44, inf  ;;  %vm966_vm11 = vcmp.eq.f32.partialorder %v2382_v44, 0.0 }
 0x125   : > { %v967_v34 = vand.u32 2147483648, %v2382_v44  ;;  %v944_v4 = vsel %vm943_vm0, %v2335_v62, %v942_v30  ;;  %v970_v56 = vmul.f32 %v1803_v16, %v2384_v50  ;;  %vm950_vm12 = vcmp.eq.f32.partialorder %v3399_v12, inf }
 0x126   : > { %v1805_v42 = vpop.eup %1804  ;;  %vm952_vm13 = vcmp.eq.f32.partialorder %v3399_v12, 0.0  ;;  %v947_v15 = vsel %vm945_vm1, %v946_v43, %v944_v4  ;;  %v953_v9 = vand.u32 2147483648, %v3399_v12  ;;  %vm978_vm14 = vcmp.eq.f32.partialorder %v2390_v51, inf }
 0x127   : > { %v956_v40 = vmul.f32 %v1805_v42, %v2341_v2  ;;  %v972_v8 = vsel %vm971_vm2, %v2384_v50, %v970_v56  ;;  %vm980_vm15 = vcmp.eq.f32.partialorder %v2390_v51, 0.0  ;;  %v981_v19 = vand.u32 2147483648, %v2390_v51 }
 0x128   : > { %v1807_v24 = vpop.eup %1806  ;;  %v394_v35 = vsub.f32 %v2766_v21, %v2168_v45  ;;  %v975_v0 = vsel %vm973_vm3, %v974_v13, %v972_v8  ;;  %v395_v60 = vsub.f32 %v2766_v21, %v2176_v52  ;;  %v1239_v26 = vmul.f32 %v947_v15, %v2335_v62 }
 0x129   : > { %v1809_v41 = vpop.eup %1808  ;;  %v958_v25 = vsel %vm957_vm4, %v2341_v2, %v956_v40  ;;  %v984_v17 = vmul.f32 %v1807_v24, %v2392_v55  ;;  %v1243_v43 = vmul.f32 %v975_v0, %v2384_v50  ;;  %v396_v56 = vsub.f32 %v2766_v21, %v2179_v53 }
 0x12a   : > { %v1811_v31 = vpop.eup %1810  ;;  %v961_v18 = vsel %vm959_vm5, %v960_v61, %v958_v25  ;;  %v935_v30 = vmul.f32 %v1809_v41, %v3398_v6  ;;  %1816 = vrsqrt.f32 %v2559_v32  ;;  %vm999_vm0 = vcmp.eq.f32.partialorder %v2559_v32, inf }
 0x12b   : > { %v1813_v13 = vpop.eup %1812  ;;  %v986_v16 = vsel %vm985_vm6, %v2392_v55, %v984_v17  ;;  %v1241_v42 = vmul.f32 %v961_v18, %v2341_v2  ;;  %v963_v4 = vmul.f32 %v1811_v31, %v2382_v44  ;;  %v1628_v15 = vpack.c.bf16 %v1243_v43, %v1239_v26  ;;  %v528_v17 = vpop.permute.xlu1 %527 }
 0x12c   : > { %v1815_v62 = vpop.eup %1814  ;;  %v989_v50 = vsel %vm987_vm7, %v988_v10, %v986_v16  ;;  %v937_v61 = vsel %vm936_vm8, %v3398_v6, %v935_v30  ;;  %v949_v40 = vmul.f32 %v1813_v13, %v3399_v12  ;;  %v624_v18 = vsub.f32 %v524_v7, %v2156_v38 }
 0x12d   : > { %v1245_v24 = vmul.f32 %v989_v50, %v2392_v55  ;;  %v940_v2 = vsel %vm938_vm9, %v939_v3, %v937_v61  ;;  %v965_v8 = vsel %vm964_vm10, %v2382_v44, %v963_v4  ;;  %v977_v41 = vmul.f32 %v1815_v62, %v2390_v51  ;;  %1629 = vmatprep.subr.bf16.mxu0 %v1628_v15 }
 0x12e   : > { %v968_v10 = vsel %vm966_vm11, %v967_v34, %v965_v8  ;;  %v1238_v0 = vmul.f32 %v940_v2, %v3398_v6  ;;  %v951_v25 = vsel %vm950_vm12, %v3399_v12, %v949_v40  ;;  %v622_v55 = vsub.f32 %v524_v7, %v2150_v36 }
 0x12f   : > { %v1660_v3 = vpack.c.bf16 %v1245_v24, %v1241_v42  ;;  %v1242_v31 = vmul.f32 %v968_v10, %v2382_v44  ;;  %v954_v26 = vsel %vm952_vm13, %v953_v9, %v951_v25  ;;  %v979_v43 = vsel %vm978_vm14, %v2390_v51, %v977_v41 }
 0x130   : > { %v982_v6 = vsel %vm980_vm15, %v981_v19, %v979_v43  ;;  %v623_v34 = vsub.f32 %v524_v7, %v2153_v37  ;;  %v625_v30 = vsub.f32 %v524_v7, %v2159_v39  ;;  %v1240_v44 = vmul.f32 %v954_v26, %v3399_v12 }
 0x131   : > { %1661 = vmatprep.subr.bf16.mxu1 %v1660_v3  ;;  %v1630_v13 = vpack.c.bf16 %v1242_v31, %v1238_v0  ;;  %v1244_v16 = vmul.f32 %v982_v6, %v2390_v51  ;;  %v626_v9 = vsub.f32 %v528_v17, %v2150_v36  ;;  %v397_v42 = vsub.f32 %v2766_v21, %v2182_v54 }
 0x132   : > { %v627_v4 = vsub.f32 %v528_v17, %v2153_v37  ;;  %v628_v19 = vsub.f32 %v528_v17, %v2156_v38  ;;  %v2859_v7 = vadd.f32 %v2747_v63, %v2742_v14  ;;  %v686_v12 = vmul.f32 %v622_v55, %v622_v55 }
 0x133   : > { %1631 = vmatpush1.bf16.msra.mxu0 %v1630_v13  ;;  %v1662_v62 = vpack.c.bf16 %v1244_v16, %v1240_v44  ;;  %v629_v51 = vsub.f32 %v528_v17, %v2159_v39  ;;  %v687_v15 = vmul.f32 %v623_v34, %v623_v34  ;;  %v688_v50 = vmul.f32 %v624_v18, %v624_v18  ;;  %v3402_v17 = vld [vmem:[#allocation25_spill] sm:$0xff]  ;;  %v2910_v44 = vpop.permute.xlu1 %306 }
 0x134   : > { %v689_v61 = vmul.f32 %v625_v30, %v625_v30  ;;  %1818 = vrsqrt.f32 %v2732_v48  ;;  %v458_v21 = vmul.f32 %v394_v35, %v394_v35  ;;  %v459_v40 = vmul.f32 %v395_v60, %v395_v60  ;;  %v1817_v43 = vpop.eup %1816 }
 0x135   : > { %1663 = vmatpush1.bf16.msra.mxu1 %v1662_v62  ;;  %v460_v24 = vmul.f32 %v396_v56, %v396_v56  ;;  %v690_v2 = vmul.f32 %v626_v9, %v626_v9  ;;  %v461_v8 = vmul.f32 %v397_v42, %v397_v42  ;;  %v691_v41 = vmul.f32 %v627_v4, %v627_v4  ;;  %v3400_v56 = vld [vmem:[#allocation23_spill] sm:$0xff]  ;;  %v3403_v62 = vld [vmem:[#allocation20_spill] sm:$0xff] }
 0x136   : > { %v692_v10 = vmul.f32 %v628_v19, %v628_v19  ;;  %1820 = vrsqrt.f32 %v2563_v58  ;;  %v2866_v14 = vadd.f32 %v2749_v47, %v2745_v28  ;;  %v2868_v63 = vadd.f32 %v686_v12, %v458_v21  ;;  %v3401_v28 = vld [vmem:[#allocation24_spill] sm:$0xff] }
 0x137   : > { %v693_v0 = vmul.f32 %v629_v51, %v629_v51  ;;  %1822 = vrsqrt.f32 %v2740_v11  ;;  %v2871_v25 = vadd.f32 %v687_v15, %v459_v40  ;;  %v2873_v35 = vadd.f32 %v688_v50, %v460_v24 }
 0x138   : > { %v2875_v60 = vadd.f32 %v689_v61, %v461_v8  ;;  %1824 = vrsqrt.f32 %v2557_v49  ;;  %v2879_v55 = vadd.f32 %v690_v2, %v3400_v56  ;;  %vm1001_vm1 = vcmp.eq.f32.partialorder %v2559_v32, 0.0 }
 0x139   : > { %1826 = vrsqrt.f32 %v2727_v57  ;;  %v2885_v47 = vadd.f32 %v691_v41, %v3401_v28  ;;  %v2888_v3 = vadd.f32 %v692_v10, %v3402_v17  ;;  %v1002_v31 = vand.u32 2147483648, %v2559_v32 }
 0x13a   : > { %1828 = vrsqrt.f32 %v2561_v29  ;;  %v2893_v26 = vadd.f32 %v693_v0, %v2550_v20  ;;  %vm1027_vm2 = vcmp.eq.f32.partialorder %v2732_v48, inf  ;;  %vm1029_vm3 = vcmp.eq.f32.partialorder %v2732_v48, 0.0 }
 0x13b   : > { %1830 = vrsqrt.f32 %v2736_v1  ;;  %v1030_v6 = vand.u32 2147483648, %v2732_v48  ;;  %vm1013_vm4 = vcmp.eq.f32.partialorder %v2563_v58, inf  ;;  %vm1015_vm5 = vcmp.eq.f32.partialorder %v2563_v58, 0.0 }
 0x13c   : > { %v1016_v34 = vand.u32 2147483648, %v2563_v58  ;;  %v998_v18 = vmul.f32 %v1817_v43, %v2559_v32  ;;  %vm1041_vm6 = vcmp.eq.f32.partialorder %v2740_v11, inf  ;;  %vm1043_vm7 = vcmp.eq.f32.partialorder %v2740_v11, 0.0 }
 0x13d   : > { %v1044_v20 = vand.u32 2147483648, %v2740_v11  ;;  %vm992_vm8 = vcmp.eq.f32.partialorder %v2557_v49, inf  ;;  %vm994_vm9 = vcmp.eq.f32.partialorder %v2557_v49, 0.0  ;;  %v995_v13 = vand.u32 2147483648, %v2557_v49 }
 0x13e   : > { %v1819_v30 = vpop.eup %1818  ;;  %vm1020_vm10 = vcmp.eq.f32.partialorder %v2727_v57, inf  ;;  %v1000_v16 = vsel %vm999_vm0, %v2559_v32, %v998_v18  ;;  %vm1022_vm11 = vcmp.eq.f32.partialorder %v2727_v57, 0.0  ;;  %v1023_v42 = vand.u32 2147483648, %v2727_v57 }
 0x13f   : > { %v1026_v9 = vmul.f32 %v1819_v30, %v2732_v48  ;;  %v1003_v19 = vsel %vm1001_vm1, %v1002_v31, %v1000_v16  ;;  %vm1006_vm12 = vcmp.eq.f32.partialorder %v2561_v29, inf  ;;  %vm1008_vm13 = vcmp.eq.f32.partialorder %v2561_v29, 0.0 }
 0x140   : > { %v1821_v4 = vpop.eup %1820  ;;  %1832 = vrsqrt.f32 %v3403_v62  ;;  %v1009_v50 = vand.u32 2147483648, %v2561_v29  ;;  %vm1034_vm14 = vcmp.eq.f32.partialorder %v2736_v1, inf  ;;  %vm1036_vm15 = vcmp.eq.f32.partialorder %v2736_v1, 0.0 }
 0x141   : > { %v1823_v12 = vpop.eup %1822  ;;  %v1028_v51 = vsel %vm1027_vm2, %v2732_v48, %v1026_v9  ;;  %v1012_v15 = vmul.f32 %v1821_v4, %v2563_v58  ;;  %v1037_v24 = vand.u32 2147483648, %v2736_v1  ;;  %v1247_v8 = vmul.f32 %v1003_v19, %v2559_v32 }
 0x142   : > { %v1825_v61 = vpop.eup %1824  ;;  %v1031_v21 = vsel %vm1029_vm3, %v1030_v6, %v1028_v51  ;;  %v1040_v40 = vmul.f32 %v1823_v12, %v2740_v11  ;;  %v2948_v32 = vsub.f32 %v2910_v44, %v2168_v45  ;;  %v407_v19 = vsub.f32 %v2910_v44, %v2176_v52 }
 0x143   : > { %v1827_v2 = vpop.eup %1826  ;;  %v1251_v41 = vmul.f32 %v1031_v21, %v2732_v48  ;;  %v1014_v10 = vsel %vm1013_vm4, %v2563_v58, %v1012_v15  ;;  %v991_v0 = vmul.f32 %v1825_v61, %v2557_v49  ;;  %v536_v48 = vpop.permute.xlu1 %535  ;;  %v409_v52 = vsub.f32 %v2910_v44, %v2182_v54 }
 0x144   : > { %v1829_v56 = vpop.eup %1828  ;;  %v1017_v28 = vsel %vm1015_vm5, %v1016_v34, %v1014_v10  ;;  %v1042_v17 = vsel %vm1041_vm6, %v2740_v11, %v1040_v40  ;;  %v1019_v31 = vmul.f32 %v1827_v2, %v2727_v57  ;;  %1834 = vrsqrt.f32 %v2754_v59 }
 0x145   : > { %v1831_v43 = vpop.eup %1830  ;;  %v1632_v6 = vpack.c.bf16 %v1251_v41, %v1247_v8  ;;  %v1045_v18 = vsel %vm1043_vm7, %v1044_v20, %v1042_v17  ;;  %v1249_v30 = vmul.f32 %v1017_v28, %v2563_v58  ;;  %v993_v34 = vsel %vm992_vm8, %v2557_v49, %v991_v0 }
 0x146   : > { %v1253_v16 = vmul.f32 %v1045_v18, %v2740_v11  ;;  %v996_v9 = vsel %vm994_vm9, %v995_v13, %v993_v34  ;;  %v1021_v45 = vsel %vm1020_vm10, %v2727_v57, %v1019_v31  ;;  %v1005_v4 = vmul.f32 %v1829_v56, %v2561_v29 }
 0x147   : > { %1633 = vmatprep.subr.bf16.mxu0 %v1632_v6  ;;  %v1024_v20 = vsel %vm1022_vm11, %v1023_v42, %v1021_v45  ;;  %v1033_v58 = vmul.f32 %v1831_v43, %v2736_v1  ;;  %v635_v11 = vsub.f32 %v536_v48, %v2153_v37  ;;  %v1246_v13 = vmul.f32 %v996_v9, %v2557_v49 }
 0x148   : > { %v1664_v12 = vpack.c.bf16 %v1253_v16, %v1249_v30  ;;  %v1250_v51 = vmul.f32 %v1024_v20, %v2727_v57  ;;  %v1007_v15 = vsel %vm1006_vm12, %v2561_v29, %v1005_v4  ;;  %v634_v21 = vsub.f32 %v536_v48, %v2150_v36  ;;  %v3404_v36 = vld [vmem:[#allocation22_spill] sm:$0xff] }
 0x149   : > { %v1010_v61 = vsel %vm1008_vm13, %v1009_v50, %v1007_v15  ;;  %v1035_v42 = vsel %vm1034_vm14, %v2736_v1, %v1033_v58  ;;  %v637_v40 = vsub.f32 %v536_v48, %v2159_v39  ;;  %v699_v8 = vmul.f32 %v635_v11, %v635_v11 }
 0x14a   : > { %v1833_v37 = vpop.eup %1832  ;;  %1665 = vmatprep.subr.bf16.mxu1 %v1664_v12  ;;  %v1634_v49 = vpack.c.bf16 %v1250_v51, %v1246_v13  ;;  %v1038_v57 = vsel %vm1036_vm15, %v1037_v24, %v1035_v42  ;;  %v1248_v50 = vmul.f32 %v1010_v61, %v2561_v29  ;;  %v2991_v54 = vsub.f32 %v2910_v44, %v2179_v53  ;;  %v3405_v44 = vld [vmem:[#allocation19_spill] sm:$0xff] }
 0x14b   : > { %v1252_v2 = vmul.f32 %v1038_v57, %v2736_v1  ;;  %v1054_v41 = vmul.f32 %v1833_v37, %v3403_v62  ;;  %v2994_v10 = vsub.f32 %v536_v48, %v2156_v38  ;;  %vm1055_vm0 = vcmp.eq.f32.partialorder %v3403_v62, inf  ;;  %v3406_v48 = vld [vmem:[#allocation21_spill] sm:$0xff] }
 0x14c   : > { %1635 = vmatpush1.bf16.msra.mxu0 %v1634_v49  ;;  %1836 = vrsqrt.f32 %v3404_v36  ;;  %v471_v24 = vmul.f32 %v407_v19, %v407_v19  ;;  %v3000_v1 = vmul.f32 %v409_v52, %v409_v52  ;;  %v3002_v0 = vmul.f32 %v634_v21, %v634_v21 }
 0x14d   : > { %v1666_v39 = vpack.c.bf16 %v1252_v2, %v1248_v50  ;;  %v1056_v29 = vsel %vm1055_vm0, %v3403_v62, %v1054_v41  ;;  %1838 = vrsqrt.f32 %v2866_v14  ;;  %v1058_v53 = vand.u32 2147483648, %v3403_v62 }
 0x14e   : > { %1840 = vrsqrt.f32 %v3405_v44  ;;  %v3006_v38 = vmul.f32 %v637_v40, %v637_v40  ;;  %v3008_v56 = vadd.f32 %v699_v8, %v471_v24  ;;  %vm1057_vm1 = vcmp.eq.f32.partialorder %v3403_v62, 0.0  ;;  %v1835_v6 = vpop.eup %1834 }
 0x14f   : > { %1667 = vmatpush1.bf16.msra.mxu1 %v1666_v39  ;;  %vm1083_vm2 = vcmp.eq.f32.partialorder %v2754_v59, inf  ;;  %v1059_v28 = vsel %vm1057_vm1, %v1058_v53, %v1056_v29  ;;  %vm1085_vm3 = vcmp.eq.f32.partialorder %v2754_v59, 0.0  ;;  %v1086_v17 = vand.u32 2147483648, %v2754_v59 }
 0x150   : > { %1842 = vrsqrt.f32 %v2752_v5  ;;  %vm1069_vm4 = vcmp.eq.f32.partialorder %v3404_v36, inf  ;;  %vm1071_vm5 = vcmp.eq.f32.partialorder %v3404_v36, 0.0  ;;  %v1072_v31 = vand.u32 2147483648, %v3404_v36 }
 0x151   : > { %1844 = vrsqrt.f32 %v3406_v48  ;;  %vm1097_vm6 = vcmp.eq.f32.partialorder %v2866_v14, inf  ;;  %vm1099_vm7 = vcmp.eq.f32.partialorder %v2866_v14, 0.0  ;;  %v1100_v43 = vand.u32 2147483648, %v2866_v14 }
 0x152   : > { %1846 = vrsqrt.f32 %v2859_v7  ;;  %v1255_v18 = vmul.f32 %v1059_v28, %v3403_v62  ;;  %vm1048_vm8 = vcmp.eq.f32.partialorder %v3405_v44, inf  ;;  %vm1050_vm9 = vcmp.eq.f32.partialorder %v3405_v44, 0.0 }
 0x153   : > { %1848 = vrsqrt.f32 %v2871_v25  ;;  %v1082_v30 = vmul.f32 %v1835_v6, %v2754_v59  ;;  %v1051_v34 = vand.u32 2147483648, %v3405_v44  ;;  %vm1076_vm10 = vcmp.eq.f32.partialorder %v2752_v5, inf }
 0x154   : > { %1850 = vrsqrt.f32 %v2885_v47  ;;  %vm1078_vm11 = vcmp.eq.f32.partialorder %v2752_v5, 0.0  ;;  %v1079_v16 = vand.u32 2147483648, %v2752_v5  ;;  %vm1062_vm12 = vcmp.eq.f32.partialorder %v3406_v48, inf }
 0x155   : > { %v1065_v62 = vand.u32 2147483648, %v3406_v48  ;;  %1852 = vrsqrt.f32 %v2875_v60  ;;  %v1084_v45 = vsel %vm1083_vm2, %v2754_v59, %v1082_v30  ;;  %vm1064_vm13 = vcmp.eq.f32.partialorder %v3406_v48, 0.0 }
 0x156   : > { %v1837_v9 = vpop.eup %1836  ;;  %vm1090_vm14 = vcmp.eq.f32.partialorder %v2859_v7, inf  ;;  %v1093_v4 = vand.u32 2147483648, %v2859_v7  ;;  %1854 = vrsqrt.f32 %v2893_v26  ;;  %v1087_v58 = vsel %vm1085_vm3, %v1086_v17, %v1084_v45 }
 0x157   : > { %v1839_v20 = vpop.eup %1838  ;;  %v1068_v19 = vmul.f32 %v1837_v9, %v3404_v36  ;;  %vm1092_vm15 = vcmp.eq.f32.partialorder %v2859_v7, 0.0  ;;  %v1114_v11 = vand.u32 2147483648, %v2871_v25  ;;  %v1259_v13 = vmul.f32 %v1087_v58, %v2754_v59 }
 0x158   : > { %v1841_v12 = vpop.eup %1840  ;;  %v1096_v51 = vmul.f32 %v1839_v20, %v2866_v14  ;;  %vm1113_vm1 = vcmp.eq.f32.partialorder %v2871_v25, 0.0  ;;  %v1142_v15 = vand.u32 2147483648, %v2885_v47  ;;  %1856 = vrsqrt.f32 %v2868_v63 }
 0x159   : > { %v1070_v61 = vsel %vm1069_vm4, %v3404_v36, %v1068_v19  ;;  %v1047_v42 = vmul.f32 %v1841_v12, %v3405_v44  ;;  %vm1141_vm3 = vcmp.eq.f32.partialorder %v2885_v47, 0.0  ;;  %vm1125_vm0 = vcmp.eq.f32.partialorder %v2875_v60, inf }
 0x15a   : > { %v1128_v59 = vand.u32 2147483648, %v2875_v60  ;;  %v1843_v52 = vpop.eup %1842  ;;  %v1636_v37 = vpack.c.bf16 %v1259_v13, %v1255_v18  ;;  %v1073_v49 = vsel %vm1071_vm5, %v1072_v31, %v1070_v61  ;;  %v1098_v57 = vsel %vm1097_vm6, %v2866_v14, %v1096_v51 }
 0x15b   : > { %vm1127_vm2 = vcmp.eq.f32.partialorder %v2875_v60, 0.0  ;;  %1858 = vrsqrt.f32 %v2879_v55  ;;  %v1845_v21 = vpop.eup %1844  ;;  %v1101_v40 = vsel %vm1099_vm7, %v1100_v43, %v1098_v57  ;;  %v1049_v50 = vsel %vm1048_vm8, %v3405_v44, %v1047_v42 }
 0x15c   : > { %v1075_v2 = vmul.f32 %v1843_v52, %v2752_v5  ;;  %vm1153_vm4 = vcmp.eq.f32.partialorder %v2893_v26, inf  ;;  %v1156_v8 = vand.u32 2147483648, %v2893_v26  ;;  %v1847_v41 = vpop.eup %1846  ;;  %1637 = vmatprep.subr.bf16.mxu0 %v1636_v37  ;;  %v1257_v39 = vmul.f32 %v1073_v49, %v3404_v36 }
 0x15d   : > { %v1261_v24 = vmul.f32 %v1101_v40, %v2866_v14  ;;  %v1052_v29 = vsel %vm1050_vm9, %v1051_v34, %v1049_v50  ;;  %v1061_v53 = vmul.f32 %v1845_v21, %v3406_v48  ;;  %vm1155_vm5 = vcmp.eq.f32.partialorder %v2893_v26, 0.0  ;;  %v1849_v28 = vpop.eup %1848 }
 0x15e   : > { %vm1104_vm6 = vcmp.eq.f32.partialorder %v2868_v63, inf  ;;  %v1077_v17 = vsel %vm1076_vm10, %v2752_v5, %v1075_v2  ;;  %v1254_v31 = vmul.f32 %v1052_v29, %v3405_v44  ;;  %v1089_v36 = vmul.f32 %v1847_v41, %v2859_v7  ;;  %v1851_v14 = vpop.eup %1850 }
 0x15f   : > { %vm1106_vm7 = vcmp.eq.f32.partialorder %v2868_v63, 0.0  ;;  %v1668_v43 = vpack.c.bf16 %v1261_v24, %v1257_v39  ;;  %v1080_v6 = vsel %vm1078_vm11, %v1079_v16, %v1077_v17  ;;  %v1063_v18 = vsel %vm1062_vm12, %v3406_v48, %v1061_v53  ;;  %v1853_v34 = vpop.eup %1852 }
 0x160   : > { %v1110_v30 = vmul.f32 %v1849_v28, %v2871_v25  ;;  %v1258_v9 = vmul.f32 %v1080_v6, %v2752_v5  ;;  %v1066_v44 = vsel %vm1064_vm13, %v1065_v62, %v1063_v18  ;;  %v1091_v45 = vsel %vm1090_vm14, %v2859_v7, %v1089_v36  ;;  %v1855_v58 = vpop.eup %1854 }
 0x161   : > { %v1138_v20 = vmul.f32 %v1851_v14, %v2885_v47  ;;  %1669 = vmatprep.subr.bf16.mxu1 %v1668_v43  ;;  %v1094_v16 = vsel %vm1092_vm15, %v1093_v4, %v1091_v45  ;;  %v1256_v19 = vmul.f32 %v1066_v44, %v3406_v48  ;;  %vm3407_vm8 = vcmp.eq.f32.partialorder %v2871_v25, inf }
 0x162   : > { %v1112_v5 = vsel %vm3407_vm8, %v2871_v25, %v1110_v30  ;;  %v1124_v12 = vmul.f32 %v1853_v34, %v2875_v60  ;;  %v1638_v62 = vpack.c.bf16 %v1258_v9, %v1254_v31  ;;  %v1260_v13 = vmul.f32 %v1094_v16, %v2859_v7  ;;  %v1857_v42 = vpop.eup %1856 }
 0x163   : > { %v1115_v51 = vsel %vm1113_vm1, %v1114_v11, %v1112_v5  ;;  %vm3408_vm9 = vcmp.eq.f32.partialorder %v2885_v47, inf  ;;  %v1152_v37 = vmul.f32 %v1855_v58, %v2893_v26  ;;  %v1103_v57 = vmul.f32 %v1857_v42, %v2868_v63 }
 0x164   : > { %v1140_v61 = vsel %vm3408_vm9, %v2885_v47, %v1138_v20  ;;  %v1263_v4 = vmul.f32 %v1115_v51, %v2871_v25  ;;  %v1126_v52 = vsel %vm1125_vm0, %v2875_v60, %v1124_v12  ;;  %1639 = vmatpush1.bf16.msra.mxu0 %v1638_v62  ;;  %v1670_v7 = vpack.c.bf16 %v1260_v13, %v1256_v19 }
 0x165   : > { %v1143_v48 = vsel %vm1141_vm3, %v1142_v15, %v1140_v61  ;;  %v1129_v49 = vsel %vm1127_vm2, %v1128_v59, %v1126_v52  ;;  %v1859_v21 = vpop.eup %1858  ;;  %v1154_v25 = vsel %vm1153_vm4, %v2893_v26, %v1152_v37  ;;  %v1107_v15 = vand.u32 2147483648, %v2868_v63 }
 0x166   : > { %v1267_v11 = vmul.f32 %v1143_v48, %v2885_v47  ;;  %vm1132_vm10 = vcmp.eq.f32.partialorder %v2879_v55, inf  ;;  %1860 = vrsqrt.f32 %v2873_v35  ;;  %1671 = vmatpush1.bf16.msra.mxu1 %v1670_v7  ;;  %v1157_v47 = vsel %vm1155_vm5, %v1156_v8, %v1154_v25 }
 0x167   : > { %v1105_v59 = vsel %vm1104_vm6, %v2868_v63, %v1103_v57  ;;  %v1131_v50 = vmul.f32 %v1859_v21, %v2879_v55  ;;  %v1265_v2 = vmul.f32 %v1129_v49, %v2875_v60  ;;  %v1269_v41 = vmul.f32 %v1157_v47, %v2893_v26 }
 0x168   : > { %v1640_v40 = vpack.c.bf16 %v1267_v11, %v1263_v4  ;;  %v1108_v39 = vsel %vm1106_vm7, %v1107_v15, %v1105_v59  ;;  %v1135_v24 = vand.u32 2147483648, %v2879_v55  ;;  %v700_v29 = vmul.f32 %v2994_v10, %v2994_v10 }
 0x169   : > { %v1133_v8 = vsel %vm1132_vm10, %v2879_v55, %v1131_v50  ;;  %vm1134_vm11 = vcmp.eq.f32.partialorder %v2879_v55, 0.0  ;;  %1862 = vrsqrt.f32 %v2888_v3  ;;  %v470_v60 = vmul.f32 %v2948_v32, %v2948_v32 }
 0x16a   : > { %1641 = vmatprep.subr.bf16.mxu0 %v1640_v40  ;;  %v3153_v26 = vadd.f32 %v3006_v38, %v3000_v1  ;;  %v1672_v53 = vpack.c.bf16 %v1269_v41, %v1265_v2  ;;  %v1136_v28 = vsel %vm1134_vm11, %v1135_v24, %v1133_v8  ;;  %v472_v17 = vmul.f32 %v2991_v54, %v2991_v54 }
 0x16b   : > { %v1262_v10 = vmul.f32 %v1108_v39, %v2868_v63  ;;  %v1266_v31 = vmul.f32 %v1136_v28, %v2879_v55  ;;  %1864 = vrsqrt.f32 %v2625_v33  ;;  %v3161_v36 = vadd.f32 %v3002_v0, %v470_v60 }
 0x16c   : > { %1673 = vmatprep.subr.bf16.mxu1 %v1672_v53  ;;  %1866 = vrsqrt.f32 %v3008_v56  ;;  %v3166_v32 = vadd.f32 %v2593_v23, %v2555_v46  ;;  %v3168_v1 = vadd.f32 %v700_v29, %v472_v17  ;;  %vm1118_vm12 = vcmp.eq.f32.partialorder %v2873_v35, inf }
 0x16d   : > { %v1642_v38 = vpack.c.bf16 %v1266_v31, %v1262_v10  ;;  %1868 = vrsqrt.f32 %v2628_v22  ;;  %vm1120_vm13 = vcmp.eq.f32.partialorder %v2873_v35, 0.0  ;;  %v1121_v63 = vand.u32 2147483648, %v2873_v35 }
 0x16e   : > { %1870 = vrsqrt.f32 %v3153_v26  ;;  %vm1146_vm14 = vcmp.eq.f32.partialorder %v2888_v3, inf  ;;  %vm1148_vm15 = vcmp.eq.f32.partialorder %v2888_v3, 0.0  ;;  %v1149_v46 = vand.u32 2147483648, %v2888_v3 }
 0x16f   : > { %1643 = vmatpush1.bf16.msra.mxu0 %v1642_v38  ;;  %1872 = vrsqrt.f32 %v2620_v27  ;;  %vm1167_vm0 = vcmp.eq.f32.partialorder %v2625_v33, inf  ;;  %vm1169_vm1 = vcmp.eq.f32.partialorder %v2625_v33, 0.0  ;;  %v1170_v55 = vand.u32 2147483648, %v2625_v33 }
 0x170   : > { %v1861_v23 = vpop.eup %1860  ;;  %1874 = vrsqrt.f32 %v3161_v36  ;;  %vm1195_vm2 = vcmp.eq.f32.partialorder %v3008_v56, inf  ;;  %vm1197_vm3 = vcmp.eq.f32.partialorder %v3008_v56, 0.0  ;;  %v1198_v0 = vand.u32 2147483648, %v3008_v56 }
 0x171   : > { %v1117_v54 = vmul.f32 %v1861_v23, %v2873_v35  ;;  %vm1181_vm4 = vcmp.eq.f32.partialorder %v2628_v22, inf  ;;  %vm1183_vm5 = vcmp.eq.f32.partialorder %v2628_v22, 0.0  ;;  %v1184_v14 = vand.u32 2147483648, %v2628_v22 }
 0x172   : > { %1876 = vrsqrt.f32 %v3166_v32  ;;  %vm1209_vm6 = vcmp.eq.f32.partialorder %v3153_v26, inf  ;;  %vm1211_vm7 = vcmp.eq.f32.partialorder %v3153_v26, 0.0  ;;  %v1212_v30 = vand.u32 2147483648, %v3153_v26 }
 0x173   : > { %v1863_v43 = vpop.eup %1862  ;;  %v1119_v6 = vsel %vm1118_vm12, %v2873_v35, %v1117_v54  ;;  %1878 = vrsqrt.f32 %v3168_v1  ;;  %vm1160_vm8 = vcmp.eq.f32.partialorder %v2620_v27, inf  ;;  %vm1162_vm9 = vcmp.eq.f32.partialorder %v2620_v27, 0.0 }
 0x174   : > { %v1145_v18 = vmul.f32 %v1863_v43, %v2888_v3  ;;  %v1122_v9 = vsel %vm1120_vm13, %v1121_v63, %v1119_v6  ;;  %v1163_v44 = vand.u32 2147483648, %v2620_v27  ;;  %vm1188_vm10 = vcmp.eq.f32.partialorder %v3161_v36, inf  ;;  %v1880_v43 = vld [vmem:[%s2126_s9] sm:$0xff]  ;;  %s1902_s9 = scalar_lea.vmem %s1901_s8, 128 }
 0x175   : > { %v1865_v34 = vpop.eup %1864  ;;  %v1967_v45 = vmov 0.0   ;;  %vm1190_vm11 = vcmp.eq.f32.partialorder %v3161_v36, 0.0  ;;  %v1191_v19 = vand.u32 2147483648, %v3161_v36  ;;  %vm1174_vm12 = vcmp.eq.f32.partialorder %v3166_v32, inf  ;;  %p1904_p0 = scmp.lt.s32.totalorder %s1902_s9, %s1896_s7 }
 0x176   : > { %1345 = vmatprep.mubr.f32.mxu0 %v1967_v45  ;;  %1416 = vmatprep.mubr.f32.mxu1 %v1967_v45  ;;  %v1867_v20 = vpop.eup %1866  ;;  %v1147_v58 = vsel %vm1146_vm14, %v2888_v3, %v1145_v18  ;;  %v1166_v16 = vmul.f32 %v1865_v34, %v2625_v33  ;;  %vm1176_vm13 = vcmp.eq.f32.partialorder %v3166_v32, 0.0  ;;  %v1264_v51 = vmul.f32 %v1122_v9, %v2873_v35  ;;  %v3409_v34 = vld [vmem:[#allocation10_spill] sm:$0xff]  ;;  %v3410_v45 = vld [vmem:[#allocation8_spill] sm:$0xff] }
 0x177   : > { %v1869_v5 = vpop.eup %1868  ;;  %v1150_v12 = vsel %vm1148_vm15, %v1149_v46, %v1147_v58  ;;  %v1194_v62 = vmul.f32 %v1867_v20, %v3008_v56  ;;  %v1177_v35 = vand.u32 2147483648, %v3166_v32  ;;  %vm1202_vm14 = vcmp.eq.f32.partialorder %v3168_v1, inf  ;;  %p1905_p1 = por %p1904_p0, %p1903_p13 }
 0x178   : > { %v1871_v13 = vpop.eup %1870  ;;  %v1268_v61 = vmul.f32 %v1150_v12, %v2888_v3  ;;  %v1168_v42 = vsel %vm1167_vm0, %v2625_v33, %v1166_v16  ;;  %v1180_v48 = vmul.f32 %v1869_v5, %v2628_v22  ;;  %vm1204_vm15 = vcmp.eq.f32.partialorder %v3168_v1, 0.0 }
 0x179   : > { %v1873_v4 = vpop.eup %1872  ;;  %v1171_v52 = vsel %vm1169_vm1, %v1170_v55, %v1168_v42  ;;  %v1196_v37 = vsel %vm1195_vm2, %v3008_v56, %v1194_v62  ;;  %v1208_v7 = vmul.f32 %v1871_v13, %v3153_v26  ;;  %v1205_v17 = vand.u32 2147483648, %v3168_v1  ;;  %p1906_p2 = pnand %p1905_p1, %p1899_p12 }
 0x17a   : > { %v1875_v11 = vpop.eup %1874  ;;  %v1674_v3 = vpack.c.bf16 %v1268_v61, %v1264_v51  ;;  %v1199_v49 = vsel %vm1197_vm3, %v1198_v0, %v1196_v37  ;;  %v1271_v57 = vmul.f32 %v1171_v52, %v2625_v33  ;;  %v1182_v21 = vsel %vm1181_vm4, %v2628_v22, %v1180_v48 }
 0x17b   : > { %v1275_v25 = vmul.f32 %v1199_v49, %v3008_v56  ;;  %v1185_v15 = vsel %vm1183_vm5, %v1184_v14, %v1182_v21  ;;  %v1210_v40 = vsel %vm1209_vm6, %v3153_v26, %v1208_v7  ;;  %v1159_v47 = vmul.f32 %v1873_v4, %v2620_v27 }
 0x17c   : > { %v1877_v59 = vpop.eup %1876  ;;  %1675 = vmatpush1.bf16.msra.mxu1 %v1674_v3  ;;  %v1213_v33 = vsel %vm1211_vm7, %v1212_v30, %v1210_v40  ;;  %v1273_v50 = vmul.f32 %v1185_v15, %v2628_v22  ;;  %v1187_v2 = vmul.f32 %v1875_v11, %v3161_v36  ;;  %v1452_v14 = vstv %s1609_s13 }
 0x17d   : > { %v1879_v56 = vpop.eup %1878  ;;  %v1644_v41 = vpack.c.bf16 %v1275_v25, %v1271_v57  ;;  %v1277_v39 = vmul.f32 %v1213_v33, %v3153_v26  ;;  %v1161_v24 = vsel %vm1160_vm8, %v2620_v27, %v1159_v47  ;;  %v1173_v29 = vmul.f32 %v1877_v59, %v3166_v32 }
 0x17e   : > { %v1164_v8 = vsel %vm1162_vm9, %v1163_v44, %v1161_v24  ;;  %v1189_v22 = vsel %vm1188_vm10, %v3161_v36, %v1187_v2  ;;  %v1201_v60 = vmul.f32 %v1879_v56, %v3168_v1  ;;  %v1453_v18 = vmul.f32 %v1880_v43, %v1452_v14 }
 0x17f   : > { %1645 = vmatprep.subr.bf16.mxu0 %v1644_v41  ;;  %v1676_v53 = vpack.c.bf16 %v1277_v39, %v1273_v50  ;;  %v1192_v26 = vsel %vm1190_vm11, %v1191_v19, %v1189_v22  ;;  %v1175_v28 = vsel %vm1174_vm12, %v3166_v32, %v1173_v29  ;;  %v1270_v10 = vmul.f32 %v1164_v8, %v2620_v27  ;;  %v1278_v27 = vld [vmem:[%s3343_s2] sm:$0x1]  ;;  %v3412_v19 = vld [vmem:[#allocation9_spill] sm:$0xff] }
 0x180   : > { %v1274_v31 = vmul.f32 %v1192_v26, %v3161_v36  ;;  %v1178_v38 = vsel %vm1176_vm13, %v1177_v35, %v1175_v28  ;;  %v1203_v63 = vsel %vm1202_vm14, %v3168_v1, %v1201_v60  ;;  %v1424_v36 = vstv %s1608_s12 }
 0x181   : > { %1677 = vmatprep.subr.bf16.mxu1 %v1676_v53  ;;  %v1206_v46 = vsel %vm1204_vm15, %v1205_v17, %v1203_v63  ;;  %v1272_v55 = vmul.f32 %v1178_v38, %v3166_v32  ;;  %v1425_v6 = vmul.f32 %v1880_v43, %v1424_v36  ;;  %v1280_v32 = vstv %s1279_s14 }
 0x182   : > { %v1646_v23 = vpack.c.bf16 %v1274_v31, %v1270_v10  ;;  %v1276_v54 = vmul.f32 %v1206_v46, %v3168_v1  ;;  %v1968_v30 = vmov 1966171168   ;;  %v3411_v20 = vsub.s32 2, %v3410_v45 }
 0x183   : > { %v1486_v1 = vunpack.c.l.s4 %v1968_v30  ;;  %v1430_v9 = vrot.slane %v1425_v6, %v3409_v34  ;;  %v1458_v5 = vrot.slane %v1453_v18, %v3412_v19  ;;  %v3413_v12 = vsub.s32 4, %v3410_v45 }
 0x184   : > { %1647 = vmatpush1.bf16.msra.mxu0 %v1646_v23  ;;  %v1678_v0 = vpack.c.bf16 %v1276_v54, %v1272_v55  ;;  %v1434_v58 = vrot.slane %v1425_v6, %v3411_v20  ;;  %v3414_v42 = vsub.s32 3, %v3410_v45  ;;  %v3415_v52 = vsub.s32 6, %v3410_v45 }
 0x185   : > { %v1438_v62 = vrot.slane %v1425_v6, %v3413_v12  ;;  %v1487_v4 = vunpack.c.0.s8 %v1486_v1  ;;  %v3416_v11 = vsub.s32 5, %v3410_v45  ;;  %v3417_v25 = vsub.s32 7, %v3410_v45 }
 0x186   : > { %1679 = vmatpush1.bf16.msra.mxu1 %v1678_v0  ;;  %v1462_v48 = vrot.slane %v1453_v18, %v3414_v42  ;;  %v1442_v37 = vrot.slane %v1425_v6, %v3415_v52  ;;  %v3418_v22 = vlaneseq }
 0x187   : > { %1346 = vmatmul.mubr.f32.vlgmr.msra.gmra.mrb[0].mxu0 %v1278_v27  ;;  %v1466_v3 = vrot.slane %v1453_v18, %v3416_v11  ;;  %v1470_v15 = vrot.slane %v1453_v18, %v3417_v25  ;;  %v1490_v33 = vsub.s32 %v1487_v4, %v3410_v45 }
 0x188   : > { %vm1510_vm0 = vcmp.lt.s32.totalorder %v3418_v22, 512 }
 0x189   : > { %1417 = vmatmul.mubr.f32.vlgmr.msra.gmra.mrb[0].mxu1 %v1278_v27 }
 0x25a   : > { %v1347_v44 = vpop.f32.mrb[0].mxu0 }
 0x25b   : > { %v1348_v16 = vadd.f32 %v1347_v44, %v1280_v32  ;;  %v1349_v13 = vpop.f32.mrb[1].mxu0 }
 0x25c   : > { %v1418_v51 = vpop.f32.mrb[0].mxu1  ;;  %v1350_v61 = vadd.f32 %v1349_v13, %v1280_v32 }
 0x25d   : > { %v1447_v7 = vadd.f32 %v1430_v9, %v1348_v16  ;;  %v1419_v35 = vadd.f32 %v1418_v51, %v1280_v32  ;;  %v1420_v49 = vpop.f32.mrb[1].mxu1 }
 0x25e   : > { %v1448_v57 = vadd.f32 %v1434_v58, %v1350_v61  ;;  %v1421_v21 = vadd.f32 %v1420_v49, %v1280_v32 }
 0x25f   : > { %v1475_v40 = vadd.f32 %v1458_v5, %v1447_v7  ;;  %v1449_v47 = vadd.f32 %v1438_v62, %v1419_v35 }
 0x260   : > { %v1476_v59 = vadd.f32 %v1462_v48, %v1448_v57  ;;  %v1450_v50 = vadd.f32 %v1442_v37, %v1421_v21 }
 0x261   : > { %v1477_v2 = vadd.f32 %v1466_v3, %v1449_v47 }
 0x262   : > { %v1483_v56 = vcombine.low %v1475_v40, %v1476_v59  ;;  %v1478_v41 = vadd.f32 %v1470_v15, %v1450_v50 }
 0x264   : > { %v1491_v39 = vrot.slane %v1483_v56, %v1490_v33  ;;  %v1484_v24 = vcombine.low %v1477_v2, %v1478_v41 }
 0x266   : > { %v1498_v29 = vrot.slane %v1484_v24, %v1490_v33 }
 0x268   : > { %v1499_v8 = vcombine.low %v1491_v39, %v1498_v29 }
 0x26a   : > { %v1506_v60 = vrot.slane %v1499_v8, %v1490_v33 }
 0x26c   : > { %1512 = vst.msk [vmem:[%s205_s27] sm:$0xf] %vm1510_vm0, %v1506_v60 }
 0x26d   : > { %1909 = shalt.err (!%p1906_p2)
}
 0x26e   : > { %s1910_s10 = scalar_lea.hbm %s3299_s5, 64  ;;  %s1914_s13 = scalar_lea.hbm %s3345_s4, 128 }
 0x26f   : > { %p1911_p3 = scmp.ne.s32.totalorder %s3299_s5, %s1910_s10  ;;  %p1915_p8 = scmp.lt.u32.totalorder %s3299_s5, %s3345_s4 }
 0x270   : > { %p1916_p9 = scmp.lt.u32.totalorder %s1914_s13, %s1910_s10  ;;  %p1918_p11 = scmp.lt.u32.totalorder %s1910_s10, %s3299_s5 }
 0x271   : > { %p1912_p4 = pnand %p1911_p3, %p2033_p5 }
 0x272   : > { %p1917_p10 = por %p1916_p9, %p1915_p8 }
 0x273   : > { %p1913_p7 = pneg %p1912_p4 }
 0x274   : > { %p1919_p12 = por %p1918_p11, %p1917_p10 }
 0x276   : > { %p1920_p13 = pnand %p1919_p12, %p1913_p7 }
 0x278   : > { %1923 = shalt.err (!%p1920_p13)
}
 0x279   : > { %1684 = dma.vmem_to_hbm [thread:$0]  (%p2033_p5), %s3301_s28, 64, %s3299_s5, %s1514_s6  }
 0x27a PF: > { %p1696_p0 = scmp.ge.s32.totalorder %s1962_s18, 2  ;;  %s1540_s22 = sand.u32 1, %s1950_s15  }
 0x27b   : > { %s1541_s23 = scalar_lea.sflag [#allocation3], %s1540_s22 }
 0x27c   : > { %p1691_p1 = pnand %p1696_p0, %p2037_p6 }
 0x27e   : > { %1945 = dma.done.wait (!%p1691_p1), %s1541_s23, 64  }
 0x27f   : > { %1947 = vsyncadd (!%p1691_p1), %s1541_s23, 4294967232  ;;  %p15_p2 = scmp.ge.s32.totalorder %s2020_s21, 4   ;;  %s3419_s15 = smov %s1954_s16 }
 0x280   : > { %s3420_s16 = smov %s1958_s17  ;;  %s3421_s17 = smov %s2031_s24 }
 0x281   : > { %s3422_s18 = smov %s2020_s21  ;;  %17 = sbr.rel (!%p15_p2) target bundleno = 4 (0x4), region = 76 }
 0x288   :  { %1546 = vsyncpa [#allocation3], 1 }
 0x289   :  { %1548 = vsyncpa [#allocation3 + $0x1], 1 }
 0x28a   :  { %1549 = vsyncpa [#allocation4], 1 }
 0x28b   :  { %1551 = vsyncpa [#allocation4 + $0x1], 1 }

</bundles_post_ra>
